<compile_context>
chip_gen: v7x
topology: tpu7x:2x2x1
jax: 0.10.0
libtpu: 0.0.40
codegen_flags: <defaults>
</compile_context>

<pallas_src>
import functools

import jax
import jax.numpy as jnp
from jax.experimental import pallas as pl
from jax.experimental.pallas import tpu as pltpu

_QK = 32  # the module hard-codes q/k to 32 channels per head (qkv[..., :32], [..., 32:64])


def _exp_bf16_out(s_shifted, use_bf16_exp):
    """exp(s - m) returned as bf16 (next MXU operand). bf16 EUP on v6e/v7x, f32 on v5e."""
    if use_bf16_exp:
        return jnp.exp(s_shifted.astype(jnp.bfloat16))
    return jnp.exp(s_shifted).astype(jnp.bfloat16)


def _deattention_kernel(x_ref, wq_ref, wk_ref, wv_ref, o_ref, k_sc, v_sc, *,
                        num_heads, in_dim, q_tile, kv_tile, n_valid, n_pad,
                        proj_chunk, use_bf16_exp):
    # x_ref : (1, n_pad, C) bf16  full (padded) batch row, resident across all q tiles
    # wq_ref: (C, H*32) bf16 (softmax scale pre-folded)   wk_ref: (C, H*32) bf16
    # wv_ref: (C, H*in_dim) bf16
    # o_ref : (1, tq, H*in_dim) f32  lane-dense output block (one full-width store/step)
    # k_sc  : (H, 32, n_pad)  bf16  K^T, head-major, pre-transposed once per batch row
    # v_sc  : (H, n_pad, in_dim) bf16  V, head-major
    H = num_heads
    qi = pl.program_id(1)
    n_kv = n_pad // kv_tile
    mask_cols = (n_valid != n_pad)           # trace-time: padded key columns exist

    # ---- K/V projection into head-major scratch, once per batch row (first q tile). ----
    # Row-chunked so the f32 projection temps stay bounded even for large N (v7x VMEM).
    @pl.when(qi == 0)
    def _():
        for c0 in range(0, n_pad, proj_chunk):                    # static chunks
            pc = min(proj_chunk, n_pad - c0)
            xc = x_ref[0, c0:c0 + pc, :]                          # (pc, C) bf16
            kc = jnp.dot(xc, wk_ref[...],
                         preferred_element_type=jnp.float32).astype(jnp.bfloat16)
            vc = jnp.dot(xc, wv_ref[...],
                         preferred_element_type=jnp.float32).astype(jnp.bfloat16)
            for h in range(H):
                # One-time relayout, amortized over every q tile of this batch row.
                k_sc[h, :, c0:c0 + pc] = kc[:, h * _QK:(h + 1) * _QK].T
                v_sc[h, c0:c0 + pc, :] = vc[:, h * in_dim:(h + 1) * in_dim]

    # ---- Q projection for this tile: one H*32-lane (256-wide) matmul, scale folded. ----
    q_start = pl.multiple_of(qi * q_tile, q_tile)
    xq = x_ref[0, pl.ds(q_start, q_tile), :]                      # (tq, C) bf16
    q_all = jnp.dot(xq, wq_ref[...],
                    preferred_element_type=jnp.float32).astype(jnp.bfloat16)  # (tq, H*32)

    out_parts = []
    for h in range(H):   # static unroll; only the small (tq,in_dim) accs stay live per head
        qh = q_all[:, h * _QK:(h + 1) * _QK]                      # (tq, 32) bf16

        if n_kv == 1:
            # Single KV block: plain softmax with deferred normalization.
            s = jnp.dot(qh, k_sc[h], preferred_element_type=jnp.float32)   # (tq, n_pad)
            if mask_cols:
                col = jax.lax.broadcasted_iota(jnp.int32, s.shape, 1)
                s = jnp.where(col < n_valid, s, -1e30)
            m = jnp.max(s, axis=-1, keepdims=True)
            p = _exp_bf16_out(s - m, use_bf16_exp)                         # bf16
            # TODO(synk): fold this row-sum into the P@V matmul (ones column appended to
            # v_sc) to move the second O(tq*N) lane reduction from the XLU onto the MXU.
            l = jnp.sum(p.astype(jnp.float32), axis=-1, keepdims=True)
            acc = jnp.dot(p, v_sc[h], preferred_element_type=jnp.float32)  # (tq, in_dim)
        else:
            # Online softmax over KV tiles: bounds f32 score/exp temps to (tq, kv_tile).
            def kv_step(kv, carry):
                m_p, l_p, a_p = carry
                kc0 = pl.multiple_of(kv * kv_tile, kv_tile)
                kh = k_sc[h, :, pl.ds(kc0, kv_tile)]                       # (32, tkv)
                vh = v_sc[h, pl.ds(kc0, kv_tile), :]                       # (tkv, in_dim)
                s = jnp.dot(qh, kh, preferred_element_type=jnp.float32)    # (tq, tkv) f32
                if mask_cols:
                    col = (jax.lax.broadcasted_iota(jnp.int32, s.shape, 1)
                           + kv * kv_tile)
                    s = jnp.where(col < n_valid, s, -1e30)
                m_n = jnp.maximum(m_p, jnp.max(s, axis=-1, keepdims=True))
                alpha = jnp.exp(m_p - m_n)
                p = _exp_bf16_out(s - m_n, use_bf16_exp)
                l_n = alpha * l_p + jnp.sum(p.astype(jnp.float32), axis=-1, keepdims=True)
                a_n = alpha * a_p + jnp.dot(p, vh, preferred_element_type=jnp.float32)
                return m_n, l_n, a_n

            init = (jnp.full((q_tile, 1), -1e30, jnp.float32),
                    jnp.zeros((q_tile, 1), jnp.float32),
                    jnp.zeros((q_tile, in_dim), jnp.float32))
            _, l, acc = jax.lax.fori_loop(0, n_kv, kv_step, init)

        inv_l = pl.reciprocal(l, approx=True)        # deferred softmax normalization
        v_skip = v_sc[h, pl.ds(q_start, q_tile), :].astype(jnp.float32)    # (tq, in_dim)
        out_parts.append(acc * inv_l + v_skip)

    # Lane-dense output: assemble all heads and write the full (tq, H*in_dim) block once.
    o_ref[0] = jnp.concatenate(out_parts, axis=-1).astype(o_ref.dtype)


def prepare_deattention_weights(w_t, *, num_heads, in_dim, scale):
    """Regroup the (transposed) PyTorch qkv weight (C, H*(in_dim+64)) into contiguous bf16
    [Q_all | K_all | V_all] slabs with the softmax scale folded into Q. Call once per
    module and reuse across forward calls (hoisted out of the per-call path)."""
    C = w_t.shape[0]
    H = num_heads
    D = in_dim + 2 * _QK
    assert w_t.shape == (C, H * D)
    w3 = w_t.reshape(C, H, D)
    wq = (w3[:, :, 0:_QK] * scale).reshape(C, H * _QK).astype(jnp.bfloat16)
    wk = w3[:, :, _QK:2 * _QK].reshape(C, H * _QK).astype(jnp.bfloat16)
    wv = w3[:, :, 2 * _QK:].reshape(C, H * in_dim).astype(jnp.bfloat16)
    return wq, wk, wv


def _tpu_generation():
    try:
        kind = jax.devices()[0].device_kind.lower()
    except Exception:
        return 6
    for g in (7, 6, 5, 4):
        if "v%d" % g in kind:
            return g
    return 6


def deattention(x, weights, *, num_heads, in_dim, q_tile=None, kv_block=None):
    """x: (B, N, C); weights: output of prepare_deattention_weights. Returns (B, N, H*in_dim)."""
    B, N, C = x.shape
    H = num_heads
    wq, wk, wv = weights
    assert wq.shape == (C, H * _QK) and wk.shape == (C, H * _QK)
    assert wv.shape == (C, H * in_dim)

    gen = _tpu_generation()

    # Generation-aware query tile: v7x has only 64 MiB physical VMEM -> smaller tiles for
    # large N; v5e/v6e (128 MiB) take bigger tiles (fewer per-step overheads).
    if q_tile is None:
        if N <= 1024:
            q_tile = N
        elif gen >= 7:
            q_tile = 256
        else:
            q_tile = 512
    tq = max(8, min(int(q_tile), max(N, 8)))
    tq = ((tq + 7) // 8) * 8                        # sublane-aligned query tile
    n_pad = ((N + tq - 1) // tq) * tq               # pad N up; padded keys masked in-kernel
    nq = n_pad // tq

    # KV tile: single block for moderate N, else online softmax over 128-multiple tiles.
    if kv_block is not None:
        tkv = int(kv_block)
        assert (tkv % 128 == 0 or tkv == n_pad) and n_pad % tkv == 0
    elif n_pad <= 2048:
        tkv = n_pad
    else:
        tkv = n_pad
        for cand in (1024, 896, 768, 640, 512, 384, 256, 128):
            if n_pad % cand == 0:
                tkv = cand
                break

    if n_pad != N:
        x = jnp.pad(x, ((0, 0), (0, n_pad - N), (0, 0)))
    xb = x.astype(jnp.bfloat16)

    proj_chunk = min(n_pad, 1024)                   # bounds f32 K/V-projection temps

    # Generation-aware VMEM budget: v7x capped ~48 MiB (64 MiB physical), v5e/v6e ~100 MiB.
    dv_phys = ((in_dim + 127) // 128) * 128
    est = (2 * n_pad * C * 2                                    # x row block (dbl-buffered)
           + 2 * (2 * C * H * _QK + C * H * in_dim) * 2         # wq/wk/wv (dbl-buffered)
           + 2 * tq * H * in_dim * 4                            # output block (dbl-buffered)
           + H * _QK * n_pad * 2                                # K^T scratch
           + H * n_pad * dv_phys * 2                            # V scratch (lane-padded)
           + proj_chunk * H * (_QK + in_dim) * 6                # projection temps
           + 6 * tq * tkv * 4                                   # live f32 score/exp temps
           + tq * H * _QK * 6                                   # q_all (f32 + bf16)
           + 3 * tq * H * in_dim * 4)                           # per-head accs + concat
    vmem_cap = (48 << 20) if gen >= 7 else (100 << 20)
    try:
        phys = getattr(pltpu.get_tpu_info(), "vmem_capacity_bytes", None)
        if phys:
            vmem_cap = min(vmem_cap, int(phys) * 3 // 4)
    except Exception:
        pass
    vmem_limit = int(min(max(est * 3 // 2 + (4 << 20), 32 << 20), vmem_cap))

    kernel = functools.partial(
        _deattention_kernel, num_heads=H, in_dim=in_dim, q_tile=tq, kv_tile=tkv,
        n_valid=N, n_pad=n_pad, proj_chunk=proj_chunk,
        use_bf16_exp=(gen >= 6))                    # v5e has no bf16 EUP -> f32 exp there

    out = pl.pallas_call(
        kernel,
        # Output kept in the input dtype (f32) to match the module; a bf16 output would
        # halve writeback traffic on v5e if the consumer tolerates it.
        out_shape=jax.ShapeDtypeStruct((B, n_pad, H * in_dim), x.dtype),
        grid_spec=pltpu.PrefetchScalarGridSpec(
            num_scalar_prefetch=0,
            grid=(B, nq),
            in_specs=[
                # x read ONCE per batch row (constant block index across qi => no
                # re-fetch); the q tile is sliced from this resident block in-kernel.
                pl.BlockSpec((1, n_pad, C), lambda b, qi: (b, 0, 0)),
                # Constant-index weight blocks (fetched once). pl.Buffered(1) would halve
                # their VMEM footprint but is not load-bearing at these weight sizes.
                pl.BlockSpec((C, H * _QK), lambda b, qi: (0, 0)),
                pl.BlockSpec((C, H * _QK), lambda b, qi: (0, 0)),
                pl.BlockSpec((C, H * in_dim), lambda b, qi: (0, 0)),
            ],
            out_specs=pl.BlockSpec((1, tq, H * in_dim), lambda b, qi: (b, qi, 0)),
            scratch_shapes=[
                pltpu.VMEM((H, _QK, n_pad), jnp.bfloat16),      # K^T, head-major
                pltpu.VMEM((H, n_pad, in_dim), jnp.bfloat16),   # V,  head-major
            ],
        ),
        # The qi axis MUST stay sequential ("arbitrary"): K/V scratch written at qi==0 is
        # carried across the q tiles of a batch row.
        # TODO(synk): for B==1 on v7x (2 TCs), shard the q-tile axis across cores with a
        # per-core K/V projection instead of batch-only megacore parallelism.
        compiler_params=pltpu.CompilerParams(
            dimension_semantics=("parallel", "arbitrary"),
            vmem_limit_bytes=vmem_limit),
    )(xb, wq, wk, wv)

    if n_pad != N:
        out = out[:, :N, :]
    return out


def deattention_ref(x, w_t, *, num_heads, in_dim, scale):
    """Pure-JAX reference of the PyTorch forward (eval: dropout = identity), with the same
    bf16 MXU-input casts as the kernel so the comparison is tight."""
    B, N, C = x.shape
    H = num_heads
    D = in_dim + 64
    w3 = w_t.reshape(C, H, D)
    wq = (w3[:, :, 0:32] * scale).reshape(C, H * 32).astype(jnp.bfloat16)
    wk = w3[:, :, 32:64].reshape(C, H * 32).astype(jnp.bfloat16)
    wv = w3[:, :, 64:].reshape(C, H * in_dim).astype(jnp.bfloat16)
    xb = x.astype(jnp.bfloat16)

    def proj(w, d):
        y = jnp.einsum('bnc,cd->bnd', xb, w,
                       preferred_element_type=jnp.float32).astype(jnp.bfloat16)
        return y.reshape(B, N, H, d).transpose(0, 2, 1, 3)              # (B, H, N, d)

    q = proj(wq, 32)
    k = proj(wk, 32)
    v = proj(wv, in_dim)

    s = jnp.einsum('bhnd,bhmd->bhnm', q, k, preferred_element_type=jnp.float32)
    p = jax.nn.softmax(s, axis=-1)
    o = jnp.einsum('bhnm,bhmd->bhnd', p.astype(jnp.bfloat16), v,
                   preferred_element_type=jnp.float32)
    o = o + v.astype(jnp.float32)                                       # +v skip
    return o.transpose(0, 2, 1, 3).reshape(B, N, H * in_dim)


if __name__ == "__main__":
    B, N, dim = 2, 16, 64
    num_heads, in_dim = 8, 32
    head_dim = dim // num_heads
    scale = head_dim ** (-0.5)                       # qk_scale=None default
    D = in_dim + 64

    key = jax.random.PRNGKey(0)
    kx, kw, kx3, kx4 = jax.random.split(key, 4)
    x = jax.random.normal(kx, (B, N, dim), dtype=jnp.float32)
    # qkv_bias=False default -> no bias. Stored as W^T: (in_features, out_features).
    w_t = (jax.random.normal(kw, (dim, num_heads * D), dtype=jnp.float32)
           * (1.0 / jnp.sqrt(jnp.float32(dim))))

    weights = prepare_deattention_weights(w_t, num_heads=num_heads, in_dim=in_dim,
                                          scale=scale)

    def check(out, ref, name):
        assert out.shape == ref.shape, name
        assert jnp.allclose(out, ref, atol=3.5e-2, rtol=3.5e-2), f"Pallas mismatch ({name})"

    ref = deattention_ref(x, w_t, num_heads=num_heads, in_dim=in_dim, scale=scale)

    # 1) single q tile / single KV block
    out = jax.block_until_ready(
        deattention(x, weights, num_heads=num_heads, in_dim=in_dim))
    check(out, ref, "tq=N")

    # 2) multiple q tiles (K/V-resident head-major scratch carried across tiles)
    out = jax.block_until_ready(
        deattention(x, weights, num_heads=num_heads, in_dim=in_dim, q_tile=8))
    check(out, ref, "tq=8")

    # 3) padded/masked path: N not a multiple of the q tile
    N3 = 20
    x3 = jax.random.normal(kx3, (B, N3, dim), dtype=jnp.float32)
    ref3 = deattention_ref(x3, w_t, num_heads=num_heads, in_dim=in_dim, scale=scale)
    out3 = jax.block_until_ready(
        deattention(x3, weights, num_heads=num_heads, in_dim=in_dim, q_tile=8))
    check(out3, ref3, "padded N")

    # 4) online-softmax KV-tiled path (as used for large N on v7x), at a small shape
    N4 = 256
    x4 = jax.random.normal(kx4, (B, N4, dim), dtype=jnp.float32)
    ref4 = deattention_ref(x4, w_t, num_heads=num_heads, in_dim=in_dim, scale=scale)
    out4 = jax.block_until_ready(
        deattention(x4, weights, num_heads=num_heads, in_dim=in_dim,
                    q_tile=128, kv_block=128))
    check(out4, ref4, "kv tiled")

    print("KERNEL_OK")
</pallas_src>

<mosaic_0001>
module attributes {stable_mosaic.version = 11 : i64} {
  func.func @_deattention_kernel(%arg0: i32, %arg1: i32, %arg2: memref<1x16x64xbf16, #tpu.memory_space<vmem>>, %arg3: memref<64x256xbf16, #tpu.memory_space<vmem>>, %arg4: memref<64x256xbf16, #tpu.memory_space<vmem>>, %arg5: memref<64x256xbf16, #tpu.memory_space<vmem>>, %arg6: memref<1x16x256xf32, #tpu.memory_space<vmem>>, %arg7: memref<8x32x16xbf16, #tpu.memory_space<vmem>>, %arg8: memref<8x16x32xbf16, #tpu.memory_space<vmem>>) attributes {dimension_semantics = [#tpu.dimension_semantics<parallel>, #tpu.dimension_semantics<arbitrary>], iteration_bounds = array<i64: 2, 1>, scalar_prefetch = 0 : i64, scratch_operands = 2 : i64, tpu.core_type = #tpu.core_type<tc>, window_params = [{transform_indices = @transform_0, window_bounds = array<i64: 1, 16, 64>}, {pipeline_mode = #tpu.pipeline_mode<synchronous>, transform_indices = @transform_1, window_bounds = array<i64: 64, 256>}, {pipeline_mode = #tpu.pipeline_mode<synchronous>, transform_indices = @transform_2, window_bounds = array<i64: 64, 256>}, {pipeline_mode = #tpu.pipeline_mode<synchronous>, transform_indices = @transform_3, window_bounds = array<i64: 64, 256>}, {transform_indices = @transform_4, window_bounds = array<i64: 1, 16, 256>}]} {
    %c0_i32 = arith.constant 0 : i32
    %0 = arith.cmpi eq, %arg1, %c0_i32 : i32
    %1 = arith.extui %0 : i1 to i32
    %c0_i32_0 = arith.constant 0 : i32
    %2 = arith.cmpi ne, %1, %c0_i32_0 : i32
    scf.if %2 {
      %c0_96 = arith.constant 0 : index
      %c0_97 = arith.constant 0 : index
      %c0_98 = arith.constant 0 : index
      %207 = vector.load %arg2[%c0_96, %c0_97, %c0_98] : memref<1x16x64xbf16, #tpu.memory_space<vmem>>, vector<1x16x64xbf16>
      %208 = vector.shape_cast %207 : vector<1x16x64xbf16> to vector<16x64xbf16>
      %c0_99 = arith.constant 0 : index
      %c0_100 = arith.constant 0 : index
      %209 = vector.load %arg4[%c0_99, %c0_100] : memref<64x256xbf16, #tpu.memory_space<vmem>>, vector<64x256xbf16>
      %cst_101 = arith.constant dense<0.000000e+00> : vector<16x256xf32>
      %210 = tpu.matmul %208, %209, %cst_101 {dimension_numbers = #tpu.dot_dimension_numbers<[1], [0], [0], [1], [0, 0, 1, 1], [], []>} : vector<16x64xbf16>, vector<64x256xbf16>, vector<16x256xf32> -> vector<16x256xf32>
      %211 = arith.truncf %210 : vector<16x256xf32> to vector<16x256xbf16>
      %c0_102 = arith.constant 0 : index
      %c0_103 = arith.constant 0 : index
      %212 = vector.load %arg5[%c0_102, %c0_103] : memref<64x256xbf16, #tpu.memory_space<vmem>>, vector<64x256xbf16>
      %cst_104 = arith.constant dense<0.000000e+00> : vector<16x256xf32>
      %213 = tpu.matmul %208, %212, %cst_104 {dimension_numbers = #tpu.dot_dimension_numbers<[1], [0], [0], [1], [0, 0, 1, 1], [], []>} : vector<16x64xbf16>, vector<64x256xbf16>, vector<16x256xf32> -> vector<16x256xf32>
      %214 = arith.truncf %213 : vector<16x256xf32> to vector<16x256xbf16>
      %215 = vector.extract_strided_slice %211 {offsets = [0, 0], sizes = [16, 32], strides = [1, 1]} : vector<16x256xbf16> to vector<16x32xbf16>
      %216 = tpu.transpose %215, [1, 0] : vector<16x32xbf16> -> vector<32x16xbf16>
      %c0_105 = arith.constant 0 : index
      %c0_106 = arith.constant 0 : index
      %c0_107 = arith.constant 0 : index
      %217 = vector.load %arg7[%c0_105, %c0_106, %c0_107] : memref<8x32x16xbf16, #tpu.memory_space<vmem>>, vector<1x32x16xbf16>
      %218 = vector.shape_cast %217 : vector<1x32x16xbf16> to vector<32x16xbf16>
      %219 = vector.shape_cast %216 : vector<32x16xbf16> to vector<1x32x16xbf16>
      tpu.vector_store %arg7[%c0_105, %c0_106, %c0_107], %219 {strides = array<i32>} : memref<8x32x16xbf16, #tpu.memory_space<vmem>>, vector<1x32x16xbf16>,
      %220 = vector.extract_strided_slice %214 {offsets = [0, 0], sizes = [16, 32], strides = [1, 1]} : vector<16x256xbf16> to vector<16x32xbf16>
      %c0_108 = arith.constant 0 : index
      %c0_109 = arith.constant 0 : index
      %c0_110 = arith.constant 0 : index
      %221 = vector.load %arg8[%c0_108, %c0_109, %c0_110] : memref<8x16x32xbf16, #tpu.memory_space<vmem>>, vector<1x16x32xbf16>
      %222 = vector.shape_cast %221 : vector<1x16x32xbf16> to vector<16x32xbf16>
      %223 = vector.shape_cast %220 : vector<16x32xbf16> to vector<1x16x32xbf16>
      tpu.vector_store %arg8[%c0_108, %c0_109, %c0_110], %223 {strides = array<i32>} : memref<8x16x32xbf16, #tpu.memory_space<vmem>>, vector<1x16x32xbf16>,
      %224 = vector.extract_strided_slice %211 {offsets = [0, 32], sizes = [16, 32], strides = [1, 1]} : vector<16x256xbf16> to vector<16x32xbf16>
      %225 = tpu.transpose %224, [1, 0] : vector<16x32xbf16> -> vector<32x16xbf16>
      %c1_111 = arith.constant 1 : index
      %c0_112 = arith.constant 0 : index
      %c0_113 = arith.constant 0 : index
      %226 = vector.load %arg7[%c1_111, %c0_112, %c0_113] : memref<8x32x16xbf16, #tpu.memory_space<vmem>>, vector<1x32x16xbf16>
      %227 = vector.shape_cast %226 : vector<1x32x16xbf16> to vector<32x16xbf16>
      %228 = vector.shape_cast %225 : vector<32x16xbf16> to vector<1x32x16xbf16>
      tpu.vector_store %arg7[%c1_111, %c0_112, %c0_113], %228 {strides = array<i32>} : memref<8x32x16xbf16, #tpu.memory_space<vmem>>, vector<1x32x16xbf16>,
      %229 = vector.extract_strided_slice %214 {offsets = [0, 32], sizes = [16, 32], strides = [1, 1]} : vector<16x256xbf16> to vector<16x32xbf16>
      %c1_114 = arith.constant 1 : index
      %c0_115 = arith.constant 0 : index
      %c0_116 = arith.constant 0 : index
      %230 = vector.load %arg8[%c1_114, %c0_115, %c0_116] : memref<8x16x32xbf16, #tpu.memory_space<vmem>>, vector<1x16x32xbf16>
      %231 = vector.shape_cast %230 : vector<1x16x32xbf16> to vector<16x32xbf16>
      %232 = vector.shape_cast %229 : vector<16x32xbf16> to vector<1x16x32xbf16>
      tpu.vector_store %arg8[%c1_114, %c0_115, %c0_116], %232 {strides = array<i32>} : memref<8x16x32xbf16, #tpu.memory_space<vmem>>, vector<1x16x32xbf16>,
      %233 = vector.extract_strided_slice %211 {offsets = [0, 64], sizes = [16, 32], strides = [1, 1]} : vector<16x256xbf16> to vector<16x32xbf16>
      %234 = tpu.transpose %233, [1, 0] : vector<16x32xbf16> -> vector<32x16xbf16>
      %c2_117 = arith.constant 2 : index
      %c0_118 = arith.constant 0 : index
      %c0_119 = arith.constant 0 : index
      %235 = vector.load %arg7[%c2_117, %c0_118, %c0_119] : memref<8x32x16xbf16, #tpu.memory_space<vmem>>, vector<1x32x16xbf16>
      %236 = vector.shape_cast %235 : vector<1x32x16xbf16> to vector<32x16xbf16>
      %237 = vector.shape_cast %234 : vector<32x16xbf16> to vector<1x32x16xbf16>
      tpu.vector_store %arg7[%c2_117, %c0_118, %c0_119], %237 {strides = array<i32>} : memref<8x32x16xbf16, #tpu.memory_space<vmem>>, vector<1x32x16xbf16>,
      %238 = vector.extract_strided_slice %214 {offsets = [0, 64], sizes = [16, 32], strides = [1, 1]} : vector<16x256xbf16> to vector<16x32xbf16>
      %c2_120 = arith.constant 2 : index
      %c0_121 = arith.constant 0 : index
      %c0_122 = arith.constant 0 : index
      %239 = vector.load %arg8[%c2_120, %c0_121, %c0_122] : memref<8x16x32xbf16, #tpu.memory_space<vmem>>, vector<1x16x32xbf16>
      %240 = vector.shape_cast %239 : vector<1x16x32xbf16> to vector<16x32xbf16>
      %241 = vector.shape_cast %238 : vector<16x32xbf16> to vector<1x16x32xbf16>
      tpu.vector_store %arg8[%c2_120, %c0_121, %c0_122], %241 {strides = array<i32>} : memref<8x16x32xbf16, #tpu.memory_space<vmem>>, vector<1x16x32xbf16>,
      %242 = vector.extract_strided_slice %211 {offsets = [0, 96], sizes = [16, 32], strides = [1, 1]} : vector<16x256xbf16> to vector<16x32xbf16>
      %243 = tpu.transpose %242, [1, 0] : vector<16x32xbf16> -> vector<32x16xbf16>
      %c3_123 = arith.constant 3 : index
      %c0_124 = arith.constant 0 : index
      %c0_125 = arith.constant 0 : index
      %244 = vector.load %arg7[%c3_123, %c0_124, %c0_125] : memref<8x32x16xbf16, #tpu.memory_space<vmem>>, vector<1x32x16xbf16>
      %245 = vector.shape_cast %244 : vector<1x32x16xbf16> to vector<32x16xbf16>
      %246 = vector.shape_cast %243 : vector<32x16xbf16> to vector<1x32x16xbf16>
      tpu.vector_store %arg7[%c3_123, %c0_124, %c0_125], %246 {strides = array<i32>} : memref<8x32x16xbf16, #tpu.memory_space<vmem>>, vector<1x32x16xbf16>,
      %247 = vector.extract_strided_slice %214 {offsets = [0, 96], sizes = [16, 32], strides = [1, 1]} : vector<16x256xbf16> to vector<16x32xbf16>
      %c3_126 = arith.constant 3 : index
      %c0_127 = arith.constant 0 : index
      %c0_128 = arith.constant 0 : index
      %248 = vector.load %arg8[%c3_126, %c0_127, %c0_128] : memref<8x16x32xbf16, #tpu.memory_space<vmem>>, vector<1x16x32xbf16>
      %249 = vector.shape_cast %248 : vector<1x16x32xbf16> to vector<16x32xbf16>
      %250 = vector.shape_cast %247 : vector<16x32xbf16> to vector<1x16x32xbf16>
      tpu.vector_store %arg8[%c3_126, %c0_127, %c0_128], %250 {strides = array<i32>} : memref<8x16x32xbf16, #tpu.memory_space<vmem>>, vector<1x16x32xbf16>,
      %251 = vector.extract_strided_slice %211 {offsets = [0, 128], sizes = [16, 32], strides = [1, 1]} : vector<16x256xbf16> to vector<16x32xbf16>
      %252 = tpu.transpose %251, [1, 0] : vector<16x32xbf16> -> vector<32x16xbf16>
      %c4_129 = arith.constant 4 : index
      %c0_130 = arith.constant 0 : index
      %c0_131 = arith.constant 0 : index
      %253 = vector.load %arg7[%c4_129, %c0_130, %c0_131] : memref<8x32x16xbf16, #tpu.memory_space<vmem>>, vector<1x32x16xbf16>
      %254 = vector.shape_cast %253 : vector<1x32x16xbf16> to vector<32x16xbf16>
      %255 = vector.shape_cast %252 : vector<32x16xbf16> to vector<1x32x16xbf16>
      tpu.vector_store %arg7[%c4_129, %c0_130, %c0_131], %255 {strides = array<i32>} : memref<8x32x16xbf16, #tpu.memory_space<vmem>>, vector<1x32x16xbf16>,
      %256 = vector.extract_strided_slice %214 {offsets = [0, 128], sizes = [16, 32], strides = [1, 1]} : vector<16x256xbf16> to vector<16x32xbf16>
      %c4_132 = arith.constant 4 : index
      %c0_133 = arith.constant 0 : index
      %c0_134 = arith.constant 0 : index
      %257 = vector.load %arg8[%c4_132, %c0_133, %c0_134] : memref<8x16x32xbf16, #tpu.memory_space<vmem>>, vector<1x16x32xbf16>
      %258 = vector.shape_cast %257 : vector<1x16x32xbf16> to vector<16x32xbf16>
      %259 = vector.shape_cast %256 : vector<16x32xbf16> to vector<1x16x32xbf16>
      tpu.vector_store %arg8[%c4_132, %c0_133, %c0_134], %259 {strides = array<i32>} : memref<8x16x32xbf16, #tpu.memory_space<vmem>>, vector<1x16x32xbf16>,
      %260 = vector.extract_strided_slice %211 {offsets = [0, 160], sizes = [16, 32], strides = [1, 1]} : vector<16x256xbf16> to vector<16x32xbf16>
      %261 = tpu.transpose %260, [1, 0] : vector<16x32xbf16> -> vector<32x16xbf16>
      %c5_135 = arith.constant 5 : index
      %c0_136 = arith.constant 0 : index
      %c0_137 = arith.constant 0 : index
      %262 = vector.load %arg7[%c5_135, %c0_136, %c0_137] : memref<8x32x16xbf16, #tpu.memory_space<vmem>>, vector<1x32x16xbf16>
      %263 = vector.shape_cast %262 : vector<1x32x16xbf16> to vector<32x16xbf16>
      %264 = vector.shape_cast %261 : vector<32x16xbf16> to vector<1x32x16xbf16>
      tpu.vector_store %arg7[%c5_135, %c0_136, %c0_137], %264 {strides = array<i32>} : memref<8x32x16xbf16, #tpu.memory_space<vmem>>, vector<1x32x16xbf16>,
      %265 = vector.extract_strided_slice %214 {offsets = [0, 160], sizes = [16, 32], strides = [1, 1]} : vector<16x256xbf16> to vector<16x32xbf16>
      %c5_138 = arith.constant 5 : index
      %c0_139 = arith.constant 0 : index
      %c0_140 = arith.constant 0 : index
      %266 = vector.load %arg8[%c5_138, %c0_139, %c0_140] : memref<8x16x32xbf16, #tpu.memory_space<vmem>>, vector<1x16x32xbf16>
      %267 = vector.shape_cast %266 : vector<1x16x32xbf16> to vector<16x32xbf16>
      %268 = vector.shape_cast %265 : vector<16x32xbf16> to vector<1x16x32xbf16>
      tpu.vector_store %arg8[%c5_138, %c0_139, %c0_140], %268 {strides = array<i32>} : memref<8x16x32xbf16, #tpu.memory_space<vmem>>, vector<1x16x32xbf16>,
      %269 = vector.extract_strided_slice %211 {offsets = [0, 192], sizes = [16, 32], strides = [1, 1]} : vector<16x256xbf16> to vector<16x32xbf16>
      %270 = tpu.transpose %269, [1, 0] : vector<16x32xbf16> -> vector<32x16xbf16>
      %c6_141 = arith.constant 6 : index
      %c0_142 = arith.constant 0 : index
      %c0_143 = arith.constant 0 : index
      %271 = vector.load %arg7[%c6_141, %c0_142, %c0_143] : memref<8x32x16xbf16, #tpu.memory_space<vmem>>, vector<1x32x16xbf16>
      %272 = vector.shape_cast %271 : vector<1x32x16xbf16> to vector<32x16xbf16>
      %273 = vector.shape_cast %270 : vector<32x16xbf16> to vector<1x32x16xbf16>
      tpu.vector_store %arg7[%c6_141, %c0_142, %c0_143], %273 {strides = array<i32>} : memref<8x32x16xbf16, #tpu.memory_space<vmem>>, vector<1x32x16xbf16>,
      %274 = vector.extract_strided_slice %214 {offsets = [0, 192], sizes = [16, 32], strides = [1, 1]} : vector<16x256xbf16> to vector<16x32xbf16>
      %c6_144 = arith.constant 6 : index
      %c0_145 = arith.constant 0 : index
      %c0_146 = arith.constant 0 : index
      %275 = vector.load %arg8[%c6_144, %c0_145, %c0_146] : memref<8x16x32xbf16, #tpu.memory_space<vmem>>, vector<1x16x32xbf16>
      %276 = vector.shape_cast %275 : vector<1x16x32xbf16> to vector<16x32xbf16>
      %277 = vector.shape_cast %274 : vector<16x32xbf16> to vector<1x16x32xbf16>
      tpu.vector_store %arg8[%c6_144, %c0_145, %c0_146], %277 {strides = array<i32>} : memref<8x16x32xbf16, #tpu.memory_space<vmem>>, vector<1x16x32xbf16>,
      %278 = vector.extract_strided_slice %211 {offsets = [0, 224], sizes = [16, 32], strides = [1, 1]} : vector<16x256xbf16> to vector<16x32xbf16>
      %279 = tpu.transpose %278, [1, 0] : vector<16x32xbf16> -> vector<32x16xbf16>
      %c7_147 = arith.constant 7 : index
      %c0_148 = arith.constant 0 : index
      %c0_149 = arith.constant 0 : index
      %280 = vector.load %arg7[%c7_147, %c0_148, %c0_149] : memref<8x32x16xbf16, #tpu.memory_space<vmem>>, vector<1x32x16xbf16>
      %281 = vector.shape_cast %280 : vector<1x32x16xbf16> to vector<32x16xbf16>
      %282 = vector.shape_cast %279 : vector<32x16xbf16> to vector<1x32x16xbf16>
      tpu.vector_store %arg7[%c7_147, %c0_148, %c0_149], %282 {strides = array<i32>} : memref<8x32x16xbf16, #tpu.memory_space<vmem>>, vector<1x32x16xbf16>,
      %283 = vector.extract_strided_slice %214 {offsets = [0, 224], sizes = [16, 32], strides = [1, 1]} : vector<16x256xbf16> to vector<16x32xbf16>
      %c7_150 = arith.constant 7 : index
      %c0_151 = arith.constant 0 : index
      %c0_152 = arith.constant 0 : index
      %284 = vector.load %arg8[%c7_150, %c0_151, %c0_152] : memref<8x16x32xbf16, #tpu.memory_space<vmem>>, vector<1x16x32xbf16>
      %285 = vector.shape_cast %284 : vector<1x16x32xbf16> to vector<16x32xbf16>
      %286 = vector.shape_cast %283 : vector<16x32xbf16> to vector<1x16x32xbf16>
      tpu.vector_store %arg8[%c7_150, %c0_151, %c0_152], %286 {strides = array<i32>} : memref<8x16x32xbf16, #tpu.memory_space<vmem>>, vector<1x16x32xbf16>,
    } else {
    }
    %c16_i32 = arith.constant 16 : i32
    %3 = arith.muli %arg1, %c16_i32 : i32
    %4 = tpu.assume_multiple %3, 16 : i32
    %c0 = arith.constant 0 : index
    %5 = arith.index_cast %4 : i32 to index
    %c0_1 = arith.constant 0 : index
    %6 = vector.load %arg2[%c0, %5, %c0_1] : memref<1x16x64xbf16, #tpu.memory_space<vmem>>, vector<1x16x64xbf16>
    %7 = vector.shape_cast %6 : vector<1x16x64xbf16> to vector<16x64xbf16>
    %c0_2 = arith.constant 0 : index
    %c0_3 = arith.constant 0 : index
    %8 = vector.load %arg3[%c0_2, %c0_3] : memref<64x256xbf16, #tpu.memory_space<vmem>>, vector<64x256xbf16>
    %cst = arith.constant dense<0.000000e+00> : vector<16x256xf32>
    %9 = tpu.matmul %7, %8, %cst {dimension_numbers = #tpu.dot_dimension_numbers<[1], [0], [0], [1], [0, 0, 1, 1], [], []>} : vector<16x64xbf16>, vector<64x256xbf16>, vector<16x256xf32> -> vector<16x256xf32>
    %10 = arith.truncf %9 : vector<16x256xf32> to vector<16x256xbf16>
    %11 = vector.extract_strided_slice %10 {offsets = [0, 0], sizes = [16, 32], strides = [1, 1]} : vector<16x256xbf16> to vector<16x32xbf16>
    %c0_4 = arith.constant 0 : index
    %c0_5 = arith.constant 0 : index
    %c0_6 = arith.constant 0 : index
    %12 = vector.load %arg7[%c0_4, %c0_5, %c0_6] : memref<8x32x16xbf16, #tpu.memory_space<vmem>>, vector<1x32x16xbf16>
    %13 = vector.shape_cast %12 : vector<1x32x16xbf16> to vector<32x16xbf16>
    %cst_7 = arith.constant dense<0.000000e+00> : vector<16x16xf32>
    %14 = tpu.matmul %11, %13, %cst_7 {dimension_numbers = #tpu.dot_dimension_numbers<[1], [0], [0], [1], [0, 0, 1, 1], [], []>} : vector<16x32xbf16>, vector<32x16xbf16>, vector<16x16xf32> -> vector<16x16xf32>
    %cst_8 = arith.constant dense<0xFF800000> : vector<16xf32>
    %15 = vector.multi_reduction <maximumf>, %14, %cst_8 [1] : vector<16x16xf32> to vector<16xf32>
    %16 = vector.shape_cast %15 : vector<16xf32> to vector<16x1xf32>
    %17 = vector.broadcast %16 : vector<16x1xf32> to vector<16x16xf32>
    %18 = arith.subf %14, %17 : vector<16x16xf32>
    %19 = arith.truncf %18 : vector<16x16xf32> to vector<16x16xbf16>
    %20 = math.exp %19 : vector<16x16xbf16>
    %21 = arith.extf %20 : vector<16x16xbf16> to vector<16x16xf32>
    %cst_9 = arith.constant dense<0.000000e+00> : vector<16xf32>
    %22 = vector.multi_reduction <add>, %21, %cst_9 [1] : vector<16x16xf32> to vector<16xf32>
    %23 = vector.shape_cast %22 : vector<16xf32> to vector<16x1xf32>
    %c0_10 = arith.constant 0 : index
    %c0_11 = arith.constant 0 : index
    %c0_12 = arith.constant 0 : index
    %24 = vector.load %arg8[%c0_10, %c0_11, %c0_12] : memref<8x16x32xbf16, #tpu.memory_space<vmem>>, vector<1x16x32xbf16>
    %25 = vector.shape_cast %24 : vector<1x16x32xbf16> to vector<16x32xbf16>
    %cst_13 = arith.constant dense<0.000000e+00> : vector<16x32xf32>
    %26 = tpu.matmul %20, %25, %cst_13 {dimension_numbers = #tpu.dot_dimension_numbers<[1], [0], [0], [1], [0, 0, 1, 1], [], []>} : vector<16x16xbf16>, vector<16x32xbf16>, vector<16x32xf32> -> vector<16x32xf32>
    %27 = tpu.reciprocal %23 {approx = true} : vector<16x1xf32> -> vector<16x1xf32>
    %c0_14 = arith.constant 0 : index
    %28 = arith.index_cast %4 : i32 to index
    %c0_15 = arith.constant 0 : index
    %29 = vector.load %arg8[%c0_14, %28, %c0_15] : memref<8x16x32xbf16, #tpu.memory_space<vmem>>, vector<1x16x32xbf16>
    %30 = vector.shape_cast %29 : vector<1x16x32xbf16> to vector<16x32xbf16>
    %31 = arith.extf %30 : vector<16x32xbf16> to vector<16x32xf32>
    %32 = vector.broadcast %27 : vector<16x1xf32> to vector<16x32xf32>
    %33 = arith.mulf %26, %32 : vector<16x32xf32>
    %34 = arith.addf %33, %31 : vector<16x32xf32>
    %35 = vector.extract_strided_slice %10 {offsets = [0, 32], sizes = [16, 32], strides = [1, 1]} : vector<16x256xbf16> to vector<16x32xbf16>
    %c1 = arith.constant 1 : index
    %c0_16 = arith.constant 0 : index
    %c0_17 = arith.constant 0 : index
    %36 = vector.load %arg7[%c1, %c0_16, %c0_17] : memref<8x32x16xbf16, #tpu.memory_space<vmem>>, vector<1x32x16xbf16>
    %37 = vector.shape_cast %36 : vector<1x32x16xbf16> to vector<32x16xbf16>
    %cst_18 = arith.constant dense<0.000000e+00> : vector<16x16xf32>
    %38 = tpu.matmul %35, %37, %cst_18 {dimension_numbers = #tpu.dot_dimension_numbers<[1], [0], [0], [1], [0, 0, 1, 1], [], []>} : vector<16x32xbf16>, vector<32x16xbf16>, vector<16x16xf32> -> vector<16x16xf32>
    %cst_19 = arith.constant dense<0xFF800000> : vector<16xf32>
    %39 = vector.multi_reduction <maximumf>, %38, %cst_19 [1] : vector<16x16xf32> to vector<16xf32>
    %40 = vector.shape_cast %39 : vector<16xf32> to vector<16x1xf32>
    %41 = vector.broadcast %40 : vector<16x1xf32> to vector<16x16xf32>
    %42 = arith.subf %38, %41 : vector<16x16xf32>
    %43 = arith.truncf %42 : vector<16x16xf32> to vector<16x16xbf16>
    %44 = math.exp %43 : vector<16x16xbf16>
    %45 = arith.extf %44 : vector<16x16xbf16> to vector<16x16xf32>
    %cst_20 = arith.constant dense<0.000000e+00> : vector<16xf32>
    %46 = vector.multi_reduction <add>, %45, %cst_20 [1] : vector<16x16xf32> to vector<16xf32>
    %47 = vector.shape_cast %46 : vector<16xf32> to vector<16x1xf32>
    %c1_21 = arith.constant 1 : index
    %c0_22 = arith.constant 0 : index
    %c0_23 = arith.constant 0 : index
    %48 = vector.load %arg8[%c1_21, %c0_22, %c0_23] : memref<8x16x32xbf16, #tpu.memory_space<vmem>>, vector<1x16x32xbf16>
    %49 = vector.shape_cast %48 : vector<1x16x32xbf16> to vector<16x32xbf16>
    %cst_24 = arith.constant dense<0.000000e+00> : vector<16x32xf32>
    %50 = tpu.matmul %44, %49, %cst_24 {dimension_numbers = #tpu.dot_dimension_numbers<[1], [0], [0], [1], [0, 0, 1, 1], [], []>} : vector<16x16xbf16>, vector<16x32xbf16>, vector<16x32xf32> -> vector<16x32xf32>
    %51 = tpu.reciprocal %47 {approx = true} : vector<16x1xf32> -> vector<16x1xf32>
    %c1_25 = arith.constant 1 : index
    %52 = arith.index_cast %4 : i32 to index
    %c0_26 = arith.constant 0 : index
    %53 = vector.load %arg8[%c1_25, %52, %c0_26] : memref<8x16x32xbf16, #tpu.memory_space<vmem>>, vector<1x16x32xbf16>
    %54 = vector.shape_cast %53 : vector<1x16x32xbf16> to vector<16x32xbf16>
    %55 = arith.extf %54 : vector<16x32xbf16> to vector<16x32xf32>
    %56 = vector.broadcast %51 : vector<16x1xf32> to vector<16x32xf32>
    %57 = arith.mulf %50, %56 : vector<16x32xf32>
    %58 = arith.addf %57, %55 : vector<16x32xf32>
    %59 = vector.extract_strided_slice %10 {offsets = [0, 64], sizes = [16, 32], strides = [1, 1]} : vector<16x256xbf16> to vector<16x32xbf16>
    %c2 = arith.constant 2 : index
    %c0_27 = arith.constant 0 : index
    %c0_28 = arith.constant 0 : index
    %60 = vector.load %arg7[%c2, %c0_27, %c0_28] : memref<8x32x16xbf16, #tpu.memory_space<vmem>>, vector<1x32x16xbf16>
    %61 = vector.shape_cast %60 : vector<1x32x16xbf16> to vector<32x16xbf16>
    %cst_29 = arith.constant dense<0.000000e+00> : vector<16x16xf32>
    %62 = tpu.matmul %59, %61, %cst_29 {dimension_numbers = #tpu.dot_dimension_numbers<[1], [0], [0], [1], [0, 0, 1, 1], [], []>} : vector<16x32xbf16>, vector<32x16xbf16>, vector<16x16xf32> -> vector<16x16xf32>
    %cst_30 = arith.constant dense<0xFF800000> : vector<16xf32>
    %63 = vector.multi_reduction <maximumf>, %62, %cst_30 [1] : vector<16x16xf32> to vector<16xf32>
    %64 = vector.shape_cast %63 : vector<16xf32> to vector<16x1xf32>
    %65 = vector.broadcast %64 : vector<16x1xf32> to vector<16x16xf32>
    %66 = arith.subf %62, %65 : vector<16x16xf32>
    %67 = arith.truncf %66 : vector<16x16xf32> to vector<16x16xbf16>
    %68 = math.exp %67 : vector<16x16xbf16>
    %69 = arith.extf %68 : vector<16x16xbf16> to vector<16x16xf32>
    %cst_31 = arith.constant dense<0.000000e+00> : vector<16xf32>
    %70 = vector.multi_reduction <add>, %69, %cst_31 [1] : vector<16x16xf32> to vector<16xf32>
    %71 = vector.shape_cast %70 : vector<16xf32> to vector<16x1xf32>
    %c2_32 = arith.constant 2 : index
    %c0_33 = arith.constant 0 : index
    %c0_34 = arith.constant 0 : index
    %72 = vector.load %arg8[%c2_32, %c0_33, %c0_34] : memref<8x16x32xbf16, #tpu.memory_space<vmem>>, vector<1x16x32xbf16>
    %73 = vector.shape_cast %72 : vector<1x16x32xbf16> to vector<16x32xbf16>
    %cst_35 = arith.constant dense<0.000000e+00> : vector<16x32xf32>
    %74 = tpu.matmul %68, %73, %cst_35 {dimension_numbers = #tpu.dot_dimension_numbers<[1], [0], [0], [1], [0, 0, 1, 1], [], []>} : vector<16x16xbf16>, vector<16x32xbf16>, vector<16x32xf32> -> vector<16x32xf32>
    %75 = tpu.reciprocal %71 {approx = true} : vector<16x1xf32> -> vector<16x1xf32>
    %c2_36 = arith.constant 2 : index
    %76 = arith.index_cast %4 : i32 to index
    %c0_37 = arith.constant 0 : index
    %77 = vector.load %arg8[%c2_36, %76, %c0_37] : memref<8x16x32xbf16, #tpu.memory_space<vmem>>, vector<1x16x32xbf16>
    %78 = vector.shape_cast %77 : vector<1x16x32xbf16> to vector<16x32xbf16>
    %79 = arith.extf %78 : vector<16x32xbf16> to vector<16x32xf32>
    %80 = vector.broadcast %75 : vector<16x1xf32> to vector<16x32xf32>
    %81 = arith.mulf %74, %80 : vector<16x32xf32>
    %82 = arith.addf %81, %79 : vector<16x32xf32>
    %83 = vector.extract_strided_slice %10 {offsets = [0, 96], sizes = [16, 32], strides = [1, 1]} : vector<16x256xbf16> to vector<16x32xbf16>
    %c3 = arith.constant 3 : index
    %c0_38 = arith.constant 0 : index
    %c0_39 = arith.constant 0 : index
    %84 = vector.load %arg7[%c3, %c0_38, %c0_39] : memref<8x32x16xbf16, #tpu.memory_space<vmem>>, vector<1x32x16xbf16>
    %85 = vector.shape_cast %84 : vector<1x32x16xbf16> to vector<32x16xbf16>
    %cst_40 = arith.constant dense<0.000000e+00> : vector<16x16xf32>
    %86 = tpu.matmul %83, %85, %cst_40 {dimension_numbers = #tpu.dot_dimension_numbers<[1], [0], [0], [1], [0, 0, 1, 1], [], []>} : vector<16x32xbf16>, vector<32x16xbf16>, vector<16x16xf32> -> vector<16x16xf32>
    %cst_41 = arith.constant dense<0xFF800000> : vector<16xf32>
    %87 = vector.multi_reduction <maximumf>, %86, %cst_41 [1] : vector<16x16xf32> to vector<16xf32>
    %88 = vector.shape_cast %87 : vector<16xf32> to vector<16x1xf32>
    %89 = vector.broadcast %88 : vector<16x1xf32> to vector<16x16xf32>
    %90 = arith.subf %86, %89 : vector<16x16xf32>
    %91 = arith.truncf %90 : vector<16x16xf32> to vector<16x16xbf16>
    %92 = math.exp %91 : vector<16x16xbf16>
    %93 = arith.extf %92 : vector<16x16xbf16> to vector<16x16xf32>
    %cst_42 = arith.constant dense<0.000000e+00> : vector<16xf32>
    %94 = vector.multi_reduction <add>, %93, %cst_42 [1] : vector<16x16xf32> to vector<16xf32>
    %95 = vector.shape_cast %94 : vector<16xf32> to vector<16x1xf32>
    %c3_43 = arith.constant 3 : index
    %c0_44 = arith.constant 0 : index
    %c0_45 = arith.constant 0 : index
    %96 = vector.load %arg8[%c3_43, %c0_44, %c0_45] : memref<8x16x32xbf16, #tpu.memory_space<vmem>>, vector<1x16x32xbf16>
    %97 = vector.shape_cast %96 : vector<1x16x32xbf16> to vector<16x32xbf16>
    %cst_46 = arith.constant dense<0.000000e+00> : vector<16x32xf32>
    %98 = tpu.matmul %92, %97, %cst_46 {dimension_numbers = #tpu.dot_dimension_numbers<[1], [0], [0], [1], [0, 0, 1, 1], [], []>} : vector<16x16xbf16>, vector<16x32xbf16>, vector<16x32xf32> -> vector<16x32xf32>
    %99 = tpu.reciprocal %95 {approx = true} : vector<16x1xf32> -> vector<16x1xf32>
    %c3_47 = arith.constant 3 : index
    %100 = arith.index_cast %4 : i32 to index
    %c0_48 = arith.constant 0 : index
    %101 = vector.load %arg8[%c3_47, %100, %c0_48] : memref<8x16x32xbf16, #tpu.memory_space<vmem>>, vector<1x16x32xbf16>
    %102 = vector.shape_cast %101 : vector<1x16x32xbf16> to vector<16x32xbf16>
    %103 = arith.extf %102 : vector<16x32xbf16> to vector<16x32xf32>
    %104 = vector.broadcast %99 : vector<16x1xf32> to vector<16x32xf32>
    %105 = arith.mulf %98, %104 : vector<16x32xf32>
    %106 = arith.addf %105, %103 : vector<16x32xf32>
    %107 = vector.extract_strided_slice %10 {offsets = [0, 128], sizes = [16, 32], strides = [1, 1]} : vector<16x256xbf16> to vector<16x32xbf16>
    %c4 = arith.constant 4 : index
    %c0_49 = arith.constant 0 : index
    %c0_50 = arith.constant 0 : index
    %108 = vector.load %arg7[%c4, %c0_49, %c0_50] : memref<8x32x16xbf16, #tpu.memory_space<vmem>>, vector<1x32x16xbf16>
    %109 = vector.shape_cast %108 : vector<1x32x16xbf16> to vector<32x16xbf16>
    %cst_51 = arith.constant dense<0.000000e+00> : vector<16x16xf32>
    %110 = tpu.matmul %107, %109, %cst_51 {dimension_numbers = #tpu.dot_dimension_numbers<[1], [0], [0], [1], [0, 0, 1, 1], [], []>} : vector<16x32xbf16>, vector<32x16xbf16>, vector<16x16xf32> -> vector<16x16xf32>
    %cst_52 = arith.constant dense<0xFF800000> : vector<16xf32>
    %111 = vector.multi_reduction <maximumf>, %110, %cst_52 [1] : vector<16x16xf32> to vector<16xf32>
    %112 = vector.shape_cast %111 : vector<16xf32> to vector<16x1xf32>
    %113 = vector.broadcast %112 : vector<16x1xf32> to vector<16x16xf32>
    %114 = arith.subf %110, %113 : vector<16x16xf32>
    %115 = arith.truncf %114 : vector<16x16xf32> to vector<16x16xbf16>
    %116 = math.exp %115 : vector<16x16xbf16>
    %117 = arith.extf %116 : vector<16x16xbf16> to vector<16x16xf32>
    %cst_53 = arith.constant dense<0.000000e+00> : vector<16xf32>
    %118 = vector.multi_reduction <add>, %117, %cst_53 [1] : vector<16x16xf32> to vector<16xf32>
    %119 = vector.shape_cast %118 : vector<16xf32> to vector<16x1xf32>
    %c4_54 = arith.constant 4 : index
    %c0_55 = arith.constant 0 : index
    %c0_56 = arith.constant 0 : index
    %120 = vector.load %arg8[%c4_54, %c0_55, %c0_56] : memref<8x16x32xbf16, #tpu.memory_space<vmem>>, vector<1x16x32xbf16>
    %121 = vector.shape_cast %120 : vector<1x16x32xbf16> to vector<16x32xbf16>
    %cst_57 = arith.constant dense<0.000000e+00> : vector<16x32xf32>
    %122 = tpu.matmul %116, %121, %cst_57 {dimension_numbers = #tpu.dot_dimension_numbers<[1], [0], [0], [1], [0, 0, 1, 1], [], []>} : vector<16x16xbf16>, vector<16x32xbf16>, vector<16x32xf32> -> vector<16x32xf32>
    %123 = tpu.reciprocal %119 {approx = true} : vector<16x1xf32> -> vector<16x1xf32>
    %c4_58 = arith.constant 4 : index
    %124 = arith.index_cast %4 : i32 to index
    %c0_59 = arith.constant 0 : index
    %125 = vector.load %arg8[%c4_58, %124, %c0_59] : memref<8x16x32xbf16, #tpu.memory_space<vmem>>, vector<1x16x32xbf16>
    %126 = vector.shape_cast %125 : vector<1x16x32xbf16> to vector<16x32xbf16>
    %127 = arith.extf %126 : vector<16x32xbf16> to vector<16x32xf32>
    %128 = vector.broadcast %123 : vector<16x1xf32> to vector<16x32xf32>
    %129 = arith.mulf %122, %128 : vector<16x32xf32>
    %130 = arith.addf %129, %127 : vector<16x32xf32>
    %131 = vector.extract_strided_slice %10 {offsets = [0, 160], sizes = [16, 32], strides = [1, 1]} : vector<16x256xbf16> to vector<16x32xbf16>
    %c5 = arith.constant 5 : index
    %c0_60 = arith.constant 0 : index
    %c0_61 = arith.constant 0 : index
    %132 = vector.load %arg7[%c5, %c0_60, %c0_61] : memref<8x32x16xbf16, #tpu.memory_space<vmem>>, vector<1x32x16xbf16>
    %133 = vector.shape_cast %132 : vector<1x32x16xbf16> to vector<32x16xbf16>
    %cst_62 = arith.constant dense<0.000000e+00> : vector<16x16xf32>
    %134 = tpu.matmul %131, %133, %cst_62 {dimension_numbers = #tpu.dot_dimension_numbers<[1], [0], [0], [1], [0, 0, 1, 1], [], []>} : vector<16x32xbf16>, vector<32x16xbf16>, vector<16x16xf32> -> vector<16x16xf32>
    %cst_63 = arith.constant dense<0xFF800000> : vector<16xf32>
    %135 = vector.multi_reduction <maximumf>, %134, %cst_63 [1] : vector<16x16xf32> to vector<16xf32>
    %136 = vector.shape_cast %135 : vector<16xf32> to vector<16x1xf32>
    %137 = vector.broadcast %136 : vector<16x1xf32> to vector<16x16xf32>
    %138 = arith.subf %134, %137 : vector<16x16xf32>
    %139 = arith.truncf %138 : vector<16x16xf32> to vector<16x16xbf16>
    %140 = math.exp %139 : vector<16x16xbf16>
    %141 = arith.extf %140 : vector<16x16xbf16> to vector<16x16xf32>
    %cst_64 = arith.constant dense<0.000000e+00> : vector<16xf32>
    %142 = vector.multi_reduction <add>, %141, %cst_64 [1] : vector<16x16xf32> to vector<16xf32>
    %143 = vector.shape_cast %142 : vector<16xf32> to vector<16x1xf32>
    %c5_65 = arith.constant 5 : index
    %c0_66 = arith.constant 0 : index
    %c0_67 = arith.constant 0 : index
    %144 = vector.load %arg8[%c5_65, %c0_66, %c0_67] : memref<8x16x32xbf16, #tpu.memory_space<vmem>>, vector<1x16x32xbf16>
    %145 = vector.shape_cast %144 : vector<1x16x32xbf16> to vector<16x32xbf16>
    %cst_68 = arith.constant dense<0.000000e+00> : vector<16x32xf32>
    %146 = tpu.matmul %140, %145, %cst_68 {dimension_numbers = #tpu.dot_dimension_numbers<[1], [0], [0], [1], [0, 0, 1, 1], [], []>} : vector<16x16xbf16>, vector<16x32xbf16>, vector<16x32xf32> -> vector<16x32xf32>
    %147 = tpu.reciprocal %143 {approx = true} : vector<16x1xf32> -> vector<16x1xf32>
    %c5_69 = arith.constant 5 : index
    %148 = arith.index_cast %4 : i32 to index
    %c0_70 = arith.constant 0 : index
    %149 = vector.load %arg8[%c5_69, %148, %c0_70] : memref<8x16x32xbf16, #tpu.memory_space<vmem>>, vector<1x16x32xbf16>
    %150 = vector.shape_cast %149 : vector<1x16x32xbf16> to vector<16x32xbf16>
    %151 = arith.extf %150 : vector<16x32xbf16> to vector<16x32xf32>
    %152 = vector.broadcast %147 : vector<16x1xf32> to vector<16x32xf32>
    %153 = arith.mulf %146, %152 : vector<16x32xf32>
    %154 = arith.addf %153, %151 : vector<16x32xf32>
    %155 = vector.extract_strided_slice %10 {offsets = [0, 192], sizes = [16, 32], strides = [1, 1]} : vector<16x256xbf16> to vector<16x32xbf16>
    %c6 = arith.constant 6 : index
    %c0_71 = arith.constant 0 : index
    %c0_72 = arith.constant 0 : index
    %156 = vector.load %arg7[%c6, %c0_71, %c0_72] : memref<8x32x16xbf16, #tpu.memory_space<vmem>>, vector<1x32x16xbf16>
    %157 = vector.shape_cast %156 : vector<1x32x16xbf16> to vector<32x16xbf16>
    %cst_73 = arith.constant dense<0.000000e+00> : vector<16x16xf32>
    %158 = tpu.matmul %155, %157, %cst_73 {dimension_numbers = #tpu.dot_dimension_numbers<[1], [0], [0], [1], [0, 0, 1, 1], [], []>} : vector<16x32xbf16>, vector<32x16xbf16>, vector<16x16xf32> -> vector<16x16xf32>
    %cst_74 = arith.constant dense<0xFF800000> : vector<16xf32>
    %159 = vector.multi_reduction <maximumf>, %158, %cst_74 [1] : vector<16x16xf32> to vector<16xf32>
    %160 = vector.shape_cast %159 : vector<16xf32> to vector<16x1xf32>
    %161 = vector.broadcast %160 : vector<16x1xf32> to vector<16x16xf32>
    %162 = arith.subf %158, %161 : vector<16x16xf32>
    %163 = arith.truncf %162 : vector<16x16xf32> to vector<16x16xbf16>
    %164 = math.exp %163 : vector<16x16xbf16>
    %165 = arith.extf %164 : vector<16x16xbf16> to vector<16x16xf32>
    %cst_75 = arith.constant dense<0.000000e+00> : vector<16xf32>
    %166 = vector.multi_reduction <add>, %165, %cst_75 [1] : vector<16x16xf32> to vector<16xf32>
    %167 = vector.shape_cast %166 : vector<16xf32> to vector<16x1xf32>
    %c6_76 = arith.constant 6 : index
    %c0_77 = arith.constant 0 : index
    %c0_78 = arith.constant 0 : index
    %168 = vector.load %arg8[%c6_76, %c0_77, %c0_78] : memref<8x16x32xbf16, #tpu.memory_space<vmem>>, vector<1x16x32xbf16>
    %169 = vector.shape_cast %168 : vector<1x16x32xbf16> to vector<16x32xbf16>
    %cst_79 = arith.constant dense<0.000000e+00> : vector<16x32xf32>
    %170 = tpu.matmul %164, %169, %cst_79 {dimension_numbers = #tpu.dot_dimension_numbers<[1], [0], [0], [1], [0, 0, 1, 1], [], []>} : vector<16x16xbf16>, vector<16x32xbf16>, vector<16x32xf32> -> vector<16x32xf32>
    %171 = tpu.reciprocal %167 {approx = true} : vector<16x1xf32> -> vector<16x1xf32>
    %c6_80 = arith.constant 6 : index
    %172 = arith.index_cast %4 : i32 to index
    %c0_81 = arith.constant 0 : index
    %173 = vector.load %arg8[%c6_80, %172, %c0_81] : memref<8x16x32xbf16, #tpu.memory_space<vmem>>, vector<1x16x32xbf16>
    %174 = vector.shape_cast %173 : vector<1x16x32xbf16> to vector<16x32xbf16>
    %175 = arith.extf %174 : vector<16x32xbf16> to vector<16x32xf32>
    %176 = vector.broadcast %171 : vector<16x1xf32> to vector<16x32xf32>
    %177 = arith.mulf %170, %176 : vector<16x32xf32>
    %178 = arith.addf %177, %175 : vector<16x32xf32>
    %179 = vector.extract_strided_slice %10 {offsets = [0, 224], sizes = [16, 32], strides = [1, 1]} : vector<16x256xbf16> to vector<16x32xbf16>
    %c7 = arith.constant 7 : index
    %c0_82 = arith.constant 0 : index
    %c0_83 = arith.constant 0 : index
    %180 = vector.load %arg7[%c7, %c0_82, %c0_83] : memref<8x32x16xbf16, #tpu.memory_space<vmem>>, vector<1x32x16xbf16>
    %181 = vector.shape_cast %180 : vector<1x32x16xbf16> to vector<32x16xbf16>
    %cst_84 = arith.constant dense<0.000000e+00> : vector<16x16xf32>
    %182 = tpu.matmul %179, %181, %cst_84 {dimension_numbers = #tpu.dot_dimension_numbers<[1], [0], [0], [1], [0, 0, 1, 1], [], []>} : vector<16x32xbf16>, vector<32x16xbf16>, vector<16x16xf32> -> vector<16x16xf32>
    %cst_85 = arith.constant dense<0xFF800000> : vector<16xf32>
    %183 = vector.multi_reduction <maximumf>, %182, %cst_85 [1] : vector<16x16xf32> to vector<16xf32>
    %184 = vector.shape_cast %183 : vector<16xf32> to vector<16x1xf32>
    %185 = vector.broadcast %184 : vector<16x1xf32> to vector<16x16xf32>
    %186 = arith.subf %182, %185 : vector<16x16xf32>
    %187 = arith.truncf %186 : vector<16x16xf32> to vector<16x16xbf16>
    %188 = math.exp %187 : vector<16x16xbf16>
    %189 = arith.extf %188 : vector<16x16xbf16> to vector<16x16xf32>
    %cst_86 = arith.constant dense<0.000000e+00> : vector<16xf32>
    %190 = vector.multi_reduction <add>, %189, %cst_86 [1] : vector<16x16xf32> to vector<16xf32>
    %191 = vector.shape_cast %190 : vector<16xf32> to vector<16x1xf32>
    %c7_87 = arith.constant 7 : index
    %c0_88 = arith.constant 0 : index
    %c0_89 = arith.constant 0 : index
    %192 = vector.load %arg8[%c7_87, %c0_88, %c0_89] : memref<8x16x32xbf16, #tpu.memory_space<vmem>>, vector<1x16x32xbf16>
    %193 = vector.shape_cast %192 : vector<1x16x32xbf16> to vector<16x32xbf16>
    %cst_90 = arith.constant dense<0.000000e+00> : vector<16x32xf32>
    %194 = tpu.matmul %188, %193, %cst_90 {dimension_numbers = #tpu.dot_dimension_numbers<[1], [0], [0], [1], [0, 0, 1, 1], [], []>} : vector<16x16xbf16>, vector<16x32xbf16>, vector<16x32xf32> -> vector<16x32xf32>
    %195 = tpu.reciprocal %191 {approx = true} : vector<16x1xf32> -> vector<16x1xf32>
    %c7_91 = arith.constant 7 : index
    %196 = arith.index_cast %4 : i32 to index
    %c0_92 = arith.constant 0 : index
    %197 = vector.load %arg8[%c7_91, %196, %c0_92] : memref<8x16x32xbf16, #tpu.memory_space<vmem>>, vector<1x16x32xbf16>
    %198 = vector.shape_cast %197 : vector<1x16x32xbf16> to vector<16x32xbf16>
    %199 = arith.extf %198 : vector<16x32xbf16> to vector<16x32xf32>
    %200 = vector.broadcast %195 : vector<16x1xf32> to vector<16x32xf32>
    %201 = arith.mulf %194, %200 : vector<16x32xf32>
    %202 = arith.addf %201, %199 : vector<16x32xf32>
    %203 = tpu.concatenate %34, %58, %82, %106, %130, %154, %178, %202 in 1 : vector<16x32xf32>, vector<16x32xf32>, vector<16x32xf32>, vector<16x32xf32>, vector<16x32xf32>, vector<16x32xf32>, vector<16x32xf32>, vector<16x32xf32> -> vector<16x256xf32>
    %c0_93 = arith.constant 0 : index
    %c0_94 = arith.constant 0 : index
    %c0_95 = arith.constant 0 : index
    %204 = vector.load %arg6[%c0_93, %c0_94, %c0_95] : memref<1x16x256xf32, #tpu.memory_space<vmem>>, vector<1x16x256xf32>
    %205 = vector.shape_cast %204 : vector<1x16x256xf32> to vector<16x256xf32>
    %206 = vector.shape_cast %203 : vector<16x256xf32> to vector<1x16x256xf32>
    tpu.vector_store %arg6[%c0_93, %c0_94, %c0_95], %206 {strides = array<i32>} : memref<1x16x256xf32, #tpu.memory_space<vmem>>, vector<1x16x256xf32>,
    return
  }
  func.func @transform_0(%arg0: i32, %arg1: i32) -> (i32, i32, i32) {
    %c0_i32 = arith.constant 0 : i32
    %c0_i32_0 = arith.constant 0 : i32
    %c0_i32_1 = arith.constant 0 : i32
    return %arg0, %c0_i32, %c0_i32_0 : i32, i32, i32
  }
  func.func @transform_1(%arg0: i32, %arg1: i32) -> (i32, i32) {
    %c0_i32 = arith.constant 0 : i32
    %c0_i32_0 = arith.constant 0 : i32
    %c0_i32_1 = arith.constant 0 : i32
    return %c0_i32, %c0_i32_0 : i32, i32
  }
  func.func @transform_2(%arg0: i32, %arg1: i32) -> (i32, i32) {
    %c0_i32 = arith.constant 0 : i32
    %c0_i32_0 = arith.constant 0 : i32
    %c0_i32_1 = arith.constant 0 : i32
    return %c0_i32, %c0_i32_0 : i32, i32
  }
  func.func @transform_3(%arg0: i32, %arg1: i32) -> (i32, i32) {
    %c0_i32 = arith.constant 0 : i32
    %c0_i32_0 = arith.constant 0 : i32
    %c0_i32_1 = arith.constant 0 : i32
    return %c0_i32, %c0_i32_0 : i32, i32
  }
  func.func @transform_4(%arg0: i32, %arg1: i32) -> (i32, i32, i32) {
    %c0_i32 = arith.constant 0 : i32
    %c0_i32_0 = arith.constant 0 : i32
    return %arg0, %arg1, %c0_i32 : i32, i32, i32
  }
}

</mosaic_0001>

<bundles_post_ra>
// kernel: tpu_custom_call.1
= control target key start
LH: loop header
LB: loop body
LE: loop exit
PB: predicated region body
PF: predicated region fallthrough
CT: control target
= control target key end

     0   :  { %9 = vsyncpa [#allocation5], 0  ;;  %s3311_s0 = inlined_call_operand.hbm [shape: bf16[2,16,64], index: 0, kind: input, shape index: {}]   ;;  %s3312_s1 = inlined_call_operand.hbm [shape: bf16[64,256], index: 1, kind: input, shape index: {}]   ;;  %s3313_s2 = inlined_call_operand.hbm [shape: bf16[64,256], index: 2, kind: input, shape index: {}]   ;;  %s3314_s3 = inlined_call_operand.hbm [shape: bf16[64,256], index: 3, kind: input, shape index: {}]   ;;  %s3315_s4 = inlined_call_operand.hbm [shape: f32[2,16,256], index: 4, kind: output, shape index: {}]  }
   0x1   :  { %11 = vsyncpa [#allocation5 + $0x1], 0 }
   0x2   :  { %12 = vsyncpa [#allocation8], 0 }
   0x3   :  { %13 = vsyncpa [#allocation11], 0 }
   0x4   :  { %14 = vsyncpa [#allocation6], 0 }
   0x5   :  { %16 = vsyncpa [#allocation6 + $0x1], 0  ;;  %s2695_s15 = smov 0   ;;  %s2697_s16 = smov 0  }
   0x6   :  { %s2699_s17 = smov 0   ;;  %s2701_s18 = smov 0  }
   0x7   :  { %s2703_s19 = smov 0   ;;  %s2705_s20 = smov 0  }
   0x8 LB: > { %s2029_s21 = sadd.s32 4294967295, %s2651_s20   ;;  %s2030_s22 = sadd.s32 4294967294, %s2651_s20   ;;  %s2651_s20 = sphi %s2705_s20, %s22_s20   ;;  %s2647_s19 = sphi %s2703_s19, %s3342_s19   ;;  %s2643_s18 = sphi %s2701_s18, %s3341_s18   ;;  %s2639_s17 = sphi %s2699_s17, %s3340_s17   ;;  %s2635_s16 = sphi %s2697_s16, %s3339_s16   ;;  %s2631_s15 = sphi %s2695_s15, %s3338_s15  }
   0x9   : > { %p54_p0 = scmp.ne.s32.totalorder %s2635_s16, %s2631_s15  ;;  %p2729_p1 = scmp.eq.s32.totalorder %s2029_s21, 0 }
   0xa   : > { %p2733_p2 = scmp.eq.s32.totalorder %s2029_s21, 1  ;;  %p149_p3 = scmp.eq.s32.totalorder %s2030_s22, 1 }
   0xb   : > { %s3321_s23 = scalar_select %p2729_p1, 1, 0 }
   0xc   : > { %s3322_s24 = scalar_select %p2733_p2, 1, 0 }
   0xd   : > { %p2739_p4 = por %p2729_p1, %p54_p0  ;;  %p2031_p5 = scmp.ge.s32.totalorder %s2651_s20, 1 }
   0xe   : > { %p2744_p6 = por %p149_p3, %p54_p0  ;;  %p156_p7 = scmp.lt.s32.totalorder %s2651_s20, 3 }
   0xf   : > { %s3323_s25 = scalar_select %p2739_p4, 1, 0 }
  0x10   : > { %s3324_s26 = scalar_select %p2744_p6, 1, 0 }
  0x11   : > { %p2749_p8 = pnand %p2031_p5, %p156_p7  ;;  %s2653_s28 = smov [#allocation7]  }
  0x12   : > { %3325 = sst [smem:[#allocation17_spill]] %s3324_s26  ;;  %s168_s29 = sshll.u32 %s2653_s28, 4  ;;  %s2753_s29 = int_to_ptr.vmem [resolvable:$true] %s168_s29 }
  0x13   : > { %s3326_s27 = scalar_select %p2749_p8, 1, 0 }
  0x14   : > { %p2272_p9 = pneg %p2749_p8  ;;  %s2654_s5 = smov [#allocation9]  }
  0x15   : > { %s181_s6 = sshll.u32 %s2654_s5, 4  ;;  %s2655_s7 = smov [#allocation10]   ;;  %s2764_s6 = int_to_ptr.vmem [resolvable:$true] %s181_s6 }
  0x16   : > { %p2760_p11 = pnand %p2272_p9, %p2729_p1  ;;  %s2766_s8 = sshll.u32 %s2655_s7, 4  ;;  %s195_s8 = int_to_ptr.vmem [resolvable:$true] %s2766_s8 }
  0x17   : > { %s2447_s11 = scalar_lea.hbm %s3312_s1, 1024 }
  0x18   : > { %p2448_p12 = scmp.ne.s32.totalorder %s3312_s1, %s2447_s11  ;;  %p2776_p13 = pneg %p2760_p11 }
  0x19   : > { %p2454_p5 = scmp.lt.u32.totalorder %s2447_s11, %s3312_s1 }
  0x1a   : > { %p2450_p0 = pnand %p2776_p13, %p2448_p12 }
  0x1c   : > { %p2451_p3 = pneg %p2450_p0 }
  0x1e   : > { %p2456_p7 = pnand %p2454_p5, %p2451_p3 }
  0x20   : > { %2459 = shalt.err (!%p2456_p7)
}
  0x21   : > { %s2460_s28 = scalar_lea.vmem %s2753_s29, 1024  ;;  %p2468_p1 = scmp.lt.s32.totalorder %s2753_s29, %s2753_s29 }
  0x22   : > { %p2461_p9 = scmp.ne.s32.totalorder %s2753_s29, %s2460_s28  ;;  %p2469_p4 = scmp.lt.s32.totalorder %s2460_s28, %s2460_s28 }
  0x24   : > { %p2463_p10 = pnand %p2461_p9, %p2776_p13  ;;  %p2470_p12 = por %p2469_p4, %p2468_p1 }
  0x26   : > { %p2464_p6 = pneg %p2463_p10 }
  0x28   : > { %p2471_p0 = pnand %p2470_p12, %p2464_p6 }
  0x2a   : > { %2474 = shalt.err (!%p2471_p0)
}
  0x2b   : > { %s2656_s5 = smov 128   ;;  %s2657_s7 = smov 8  }
  0x2c   : > { %2275 = dma.hbm_to_vmem [thread:$0]  (!%p2760_p11), %s3312_s1, 1024, %s2753_s29, [#allocation8], %s2656_s5, %s2656_s5, %s2657_s7  }
  0x2d   : > { %s2475_s13 = scalar_lea.hbm %s3313_s2, 1024 }
  0x2e   : > { %p2476_p1 = scmp.ne.s32.totalorder %s3313_s2, %s2475_s13  ;;  %p2482_p10 = scmp.lt.u32.totalorder %s2475_s13, %s3313_s2 }
  0x30   : > { %p2478_p4 = pnand %p2476_p1, %p2776_p13 }
  0x32   : > { %p2479_p6 = pneg %p2478_p4 }
  0x34   : > { %p2484_p3 = pnand %p2482_p10, %p2479_p6 }
  0x36   : > { %2487 = shalt.err (!%p2484_p3)
}
  0x37   : > { %s2488_s29 = scalar_lea.vmem %s2764_s6, 1024  ;;  %p2496_p12 = scmp.lt.s32.totalorder %s2764_s6, %s2764_s6 }
  0x38   : > { %p2489_p5 = scmp.ne.s32.totalorder %s2764_s6, %s2488_s29  ;;  %p2497_p0 = scmp.lt.s32.totalorder %s2488_s29, %s2488_s29 }
  0x3a   : > { %p2491_p7 = pnand %p2489_p5, %p2776_p13  ;;  %p2498_p1 = por %p2497_p0, %p2496_p12 }
  0x3c   : > { %p2492_p9 = pneg %p2491_p7 }
  0x3e   : > { %p2499_p4 = pnand %p2498_p1, %p2492_p9 }
  0x40   : > { %2502 = shalt.err (!%p2499_p4)
}
  0x41   : > { %2278 = dma.hbm_to_vmem [thread:$0]  (!%p2760_p11), %s3313_s2, 1024, %s2764_s6, [#allocation8], %s2656_s5, %s2656_s5, %s2657_s7  }
  0x42   : > { %s2503_s12 = scalar_lea.hbm %s3314_s3, 1024 }
  0x43   : > { %p2504_p6 = scmp.ne.s32.totalorder %s3314_s3, %s2503_s12  ;;  %p2510_p5 = scmp.lt.u32.totalorder %s2503_s12, %s3314_s3 }
  0x45   : > { %p2506_p10 = pnand %p2504_p6, %p2776_p13 }
  0x47   : > { %p2507_p3 = pneg %p2506_p10 }
  0x49   : > { %p2512_p7 = pnand %p2510_p5, %p2507_p3 }
  0x4b   : > { %2515 = shalt.err (!%p2512_p7)
}
  0x4c   : > { %s2516_s29 = scalar_lea.vmem %s195_s8, 1024  ;;  %p2524_p1 = scmp.lt.s32.totalorder %s195_s8, %s195_s8 }
  0x4d   : > { %p2517_p9 = scmp.ne.s32.totalorder %s195_s8, %s2516_s29  ;;  %p2525_p4 = scmp.lt.s32.totalorder %s2516_s29, %s2516_s29 }
  0x4f   : > { %p2519_p12 = pnand %p2517_p9, %p2776_p13  ;;  %p2526_p8 = por %p2525_p4, %p2524_p1 }
  0x51   : > { %p2520_p0 = pneg %p2519_p12 }
  0x53   : > { %p2527_p2 = pnand %p2526_p8, %p2520_p0 }
  0x55   : > { %2530 = shalt.err (!%p2527_p2)
}
  0x56   : > { %2281 = dma.hbm_to_vmem [thread:$0]  (!%p2760_p11), %s3314_s3, 1024, %s195_s8, [#allocation11], %s2656_s5, %s2656_s5, %s2657_s7  }
  0x57   : > { %s41_s14 = sadd.s32 1, %s2639_s17  ;;  %s34_s30 = sadd.s32 1, %s2647_s19 }
  0x58   : > { %p48_p2 = scmp.ne.s32.totalorder %s2639_s17, %s2635_s16  ;;  %p36_p8 = scmp.ge.s32.totalorder %s34_s30, 2 }
  0x59   : > { %p49_p13 = scmp.eq.s32.totalorder %s2651_s20, 0  ;;  %p3329_p6 = scmp.ne.s32.totalorder %s3322_s24, 0 }
  0x5a   : > { %p2293_p3 = scmp.lt.s32.totalorder %s2651_s20, 2  ;;  %s3344_s30 = smov (%p36_p8, %s34_s30), 0 }
  0x5b   : > { %p2855_p10 = por %p3329_p6, %p48_p2  ;;  %p50_p5 = por %p49_p13, %p48_p2 }
  0x5c   : > { %s208_s10 = sand.u32 1, %s2639_s17   ;;  %s38_s11 = ssub.s32 %s2647_s19, %s3344_s30 }
  0x5d   : > { %p39_p7 = scmp.eq.s32.totalorder %s38_s11, 0  ;;  %s2036_s8 = sshll.u32 %s208_s10, 3 }
  0x5e   : > { %s2102_s5 = sshll.u32 %s2647_s19, 7  ;;  %s212_s21 = scalar_lea.vmem [#allocation4], %s2036_s8 }
  0x5f   : > { %s2867_s7 = scalar_select %p39_p7, %s2639_s17, %s41_s14  }
  0x60   : > { %s2872_s24 = scalar_lea.hbm %s3311_s0, %s2102_s5  ;;  %s219_s22 = sshll.u32 %s212_s21, 4  ;;  %s2874_s22 = int_to_ptr.vmem [resolvable:$true] %s219_s22 }
  0x61   : > { %p2878_p11 = pnand %p2293_p3, %p50_p5  ;;  %s2882_s29 = scalar_lea.sflag [#allocation5], %s208_s10 }
  0x62   : > { %s2531_s6 = scalar_lea.hbm %s2872_s24, 128  ;;  %s2536_s11 = scalar_lea.hbm %s3311_s0, 256 }
  0x63   : > { %p2532_p9 = scmp.ne.s32.totalorder %s2872_s24, %s2531_s6  ;;  %p2533_p12 = pneg %p2878_p11 }
  0x64   : > { %p2537_p4 = scmp.lt.u32.totalorder %s2872_s24, %s3311_s0  ;;  %p2538_p2 = scmp.lt.u32.totalorder %s2536_s11, %s2531_s6 }
  0x65   : > { %p2534_p0 = pnand %p2533_p12, %p2532_p9  ;;  %p2540_p13 = scmp.lt.u32.totalorder %s2531_s6, %s2872_s24 }
  0x66   : > { %p2539_p8 = por %p2538_p2, %p2537_p4 }
  0x67   : > { %p2535_p1 = pneg %p2534_p0 }
  0x68   : > { %p2541_p6 = por %p2540_p13, %p2539_p8 }
  0x6a   : > { %p2542_p3 = pnand %p2541_p6, %p2535_p1 }
  0x6c   : > { %2545 = shalt.err (!%p2542_p3)
}
  0x6d   : > { %s2546_s10 = scalar_lea.vmem %s2874_s22, 128  ;;  %s2658_s12 = smov [#allocation4]  }
  0x6e   : > { %p2547_p5 = scmp.ne.s32.totalorder %s2874_s22, %s2546_s10  ;;  %s2551_s13 = sshll.u32 %s2658_s12, 4  ;;  %s2552_s13 = int_to_ptr.vmem [resolvable:$false] %s2551_s13 }
  0x6f   : > { %s2553_s21 = scalar_lea.vmem %s2552_s13, 256  ;;  %p2554_p0 = scmp.lt.s32.totalorder %s2874_s22, %s2552_s13 }
  0x70   : > { %p2549_p7 = pnand %p2547_p5, %p2533_p12  ;;  %p2555_p4 = scmp.lt.s32.totalorder %s2553_s21, %s2546_s10 }
  0x72   : > { %p2550_p9 = pneg %p2549_p7  ;;  %p2556_p2 = por %p2555_p4, %p2554_p0 }
  0x74   : > { %p2557_p8 = pnand %p2556_p2, %p2550_p9 }
  0x76   : > { %2560 = shalt.err (!%p2557_p8)
}
  0x77   : > { %s2659_s6 = smov 64   ;;  %s2660_s26 = smov 4  }
  0x78   : > { %2285 = dma.hbm_to_vmem [thread:$0]  (!%p2878_p11), %s2872_s24, 128, %s2874_s22, %s2882_s29, %s2659_s6, %s2659_s6, %s2660_s26  }
  0x79   : > { %p3332_p12 = scmp.ne.s32.totalorder %s3326_s27, 0 }
  0x7a   : > { %s2913_s14 = sand.u32 (!%p3332_p12), 1, %s2635_s16   ;;  %p3333_p1 = scmp.ne.s32.totalorder (!%p3332_p12), %s3323_s25, 0 }
  0x7b   : > { %231 = sbr.rel (%p3332_p12) target bundleno = 1410 (0x582), region = 36  ;;  %s2040_s11 = sshll.u32 (!%p3332_p12), %s2913_s14, 3 }
  0x7c   : > { %s234_s8 = scalar_lea.sflag (!%p3332_p12), [#allocation5], %s2913_s14  ;;  %s2917_s5 = scalar_lea.vmem (!%p3332_p12), [#allocation4], %s2040_s11 }
  0x82   : > { %2614 = dma.done.wait (%p3333_p1), %s234_s8, 128  }
  0x83   : > { %2616 = vsyncadd (%p3333_p1), %s234_s8, 4294967168  ;;  %p3334_p11 = scmp.ne.s32.totalorder %s3321_s23, 0 }
  0x85   : > { %2618 = dma.done.wait (%p3334_p11), [#allocation8], 2048  }
  0x86   : > { %2620 = vsyncadd (%p3334_p11), [#allocation8], 4294965248 }
  0x87   : > { %2622 = dma.done.wait (%p3334_p11), [#allocation11], 1024  }
  0x88   : > { %2624 = vsyncadd (%p3334_p11), [#allocation11], 4294966272  ;;  %v2661_v0 = vmov 0   ;;  %v2361_v1 = vld [vmem:[#allocation9 + $0x4] ss:$8 sps:$4 sm:$0xff]   ;;  %v2373_v9 = vld [vmem:[%s2917_s5] sm:$0xff]  }
  0x89   : > { %371 = vmatprep.mubr.bf16.mxu0 %v2661_v0  ;;  %464 = vmatprep.mubr.bf16.mxu1 %v2661_v0  ;;  %v2363_v2 = vld [vmem:[#allocation9] ss:$8 sps:$4 sm:$0xff]   ;;  %v2364_v3 = vld [vmem:[#allocation9 + $0x14] ss:$8 sps:$4 sm:$0xff]   ;;  %v2366_v4 = vld [vmem:[#allocation9 + $0x10] ss:$8 sps:$4 sm:$0xff]  }
  0x8a   : > { %339 = vmatprep.subr.bf16.mxu0 %v2361_v1  ;;  %v2367_v5 = vld [vmem:[#allocation9 + $0x24] ss:$8 sps:$4 sm:$0xff]   ;;  %v2369_v6 = vld [vmem:[#allocation9 + $0x20] ss:$8 sps:$4 sm:$0xff]   ;;  %v2370_v7 = vld [vmem:[#allocation9 + $0x34] ss:$8 sps:$4 sm:$0xff]  }
  0x8b   : > { %340 = vmatpush1.bf16.msra.mxu0 %v2363_v2  ;;  %v2372_v8 = vld [vmem:[#allocation9 + $0x30] ss:$8 sps:$4 sm:$0xff]   ;;  %v2376_v10 = vld [vmem:[#allocation7 + $0x4] ss:$8 sps:$4 sm:$0xff]   ;;  %vm335_vm0 = vcmask 523264   ;;  %s2662_s23 = smov 32  }
  0x8c   : > { %341 = vmatprep.subr.bf16.mxu0 %v2364_v3  ;;  %v2374_v11 = vld [vmem:[#allocation7] ss:$8 sps:$4 sm:$0xff]   ;;  %v2379_v12 = vld [vmem:[#allocation7 + $0x14] ss:$8 sps:$4 sm:$0xff]   ;;  %v2377_v13 = vld [vmem:[#allocation7 + $0x10] ss:$8 sps:$4 sm:$0xff]  }
  0x8d   : > { %v2382_v14 = vld [vmem:[#allocation7 + $0x24] ss:$8 sps:$4 sm:$0xff]   ;;  %v2380_v15 = vld [vmem:[#allocation7 + $0x20] ss:$8 sps:$4 sm:$0xff]   ;;  %v2385_v16 = vld [vmem:[#allocation7 + $0x34] ss:$8 sps:$4 sm:$0xff]  }
  0x8e   : > { %v2383_v17 = vld [vmem:[#allocation7 + $0x30] ss:$8 sps:$4 sm:$0xff]   ;;  %v2387_v19 = vld [vmem:[#allocation10 + $0x4] ss:$8 sps:$4 sm:$0xff]   ;;  %v2389_v20 = vld [vmem:[#allocation10] ss:$8 sps:$4 sm:$0xff]  }
  0x8f   : > { %342 = vmatpush1.bf16.msra.mxu0 %v2366_v4  ;;  %v2386_v18 = vld [vmem:[%s2917_s5] sm:$0xff]   ;;  %432 = vmatprep.subr.bf16.mxu1 %v2387_v19  ;;  %v2393_v23 = vld [vmem:[#allocation10 + $0x24] ss:$8 sps:$4 sm:$0xff]   ;;  %v2395_v24 = vld [vmem:[#allocation10 + $0x20] ss:$8 sps:$4 sm:$0xff]   ;;  %s2663_s25 = smov 96  }
  0x90   : > { %343 = vmatprep.subr.bf16.mxu0 %v2367_v5  ;;  %v2390_v21 = vld [vmem:[#allocation10 + $0x14] ss:$8 sps:$4 sm:$0xff]   ;;  %433 = vmatpush1.bf16.msra.mxu1 %v2389_v20  ;;  %v2392_v22 = vld [vmem:[#allocation10 + $0x10] ss:$8 sps:$4 sm:$0xff]   ;;  %s2664_s27 = smov 64   ;;  %v2665_v38 = vmov 0.0  }
  0x91   : > { %434 = vmatprep.subr.bf16.mxu1 %v2390_v21  ;;  %v2396_v25 = vld [vmem:[#allocation10 + $0x34] ss:$8 sps:$4 sm:$0xff]   ;;  %v2398_v26 = vld [vmem:[#allocation10 + $0x30] ss:$8 sps:$4 sm:$0xff]   ;;  %vm2666_vm1 = vmmov 0   ;;  %vm493_vm2 = vcmask 130048  }
  0x92   : > { %vm496_vm3 = vcmask 261120   ;;  %s2044_s24 = sshll.u32 %s2913_s14, 5  ;;  %vm1861_vm4 = vcmask 785408   ;;  %s2103_s29 = sshll.u32 %s2643_s18, 9 }
  0x93   : > { %344 = vmatpush1.bf16.msra.mxu0 %v2369_v6  ;;  %s3238_s22 = scalar_lea.vmem [#allocation12], %s2044_s24  ;;  %s3258_s18 = scalar_lea.hbm %s3315_s4, %s2103_s29 }
  0x94   : > { %345 = vmatprep.subr.bf16.mxu0 %v2370_v7  ;;  %435 = vmatpush1.bf16.msra.mxu1 %v2392_v22  ;;  %s1891_s28 = sshll.u32 %s3238_s22, 4  ;;  %s1875_s13 = scalar_lea.sflag [#allocation6], %s2913_s14  ;;  %s3250_s28 = int_to_ptr.vmem [resolvable:$true] %s1891_s28 }
  0x95   : > { %436 = vmatprep.subr.bf16.mxu1 %v2393_v23  ;;  %s2561_s21 = scalar_lea.vmem %s3250_s28, 512  ;;  %s2667_s6 = smov [#allocation12]  }
  0x96   : > { %p2562_p13 = scmp.ne.s32.totalorder %s3250_s28, %s2561_s21  ;;  %s2565_s26 = sshll.u32 %s2667_s6, 4  ;;  %s2566_s26 = int_to_ptr.vmem [resolvable:$false] %s2565_s26 }
  0x97   : > { %346 = vmatpush1.bf16.msra.mxu0 %v2372_v8  ;;  %s2567_s11 = scalar_lea.vmem %s2566_s26, 1024  ;;  %p2568_p5 = scmp.lt.s32.totalorder %s3250_s28, %s2566_s26 }
  0x98   : > { %749 = vmatprep.subr.bf16.mxu0 %v2376_v10  ;;  %437 = vmatpush1.bf16.msra.mxu1 %v2395_v24  ;;  %p2563_p6 = pnand %p2562_p13, %p2855_p10  ;;  %p2569_p7 = scmp.lt.s32.totalorder %s2567_s11, %s2561_s21 }
  0x99   : > { %438 = vmatprep.subr.bf16.mxu1 %v2396_v25 }
  0x9a   : > { %2054 = vmatmul.mubr.msk.bf16.vlgmr.msra.gmra.mrb[0].mxu0 %vm335_vm0, %v2373_v9  ;;  %p2564_p3 = pneg %p2563_p6  ;;  %p2570_p9 = por %p2569_p7, %p2568_p5 }
  0x9b   : > { %750 = vmatpush1.bf16.msra.mxu0 %v2374_v11  ;;  %781 = vmatprep.mubr.bf16.mxu0 %v2661_v0 }
  0x9c   : > { %751 = vmatprep.subr.bf16.mxu0 %v2379_v12  ;;  %439 = vmatpush1.bf16.msra.mxu1 %v2398_v26  ;;  %p2571_p0 = pnand %p2570_p9, %p2564_p3 }
  0x9d   : > { %2144 = vmatprep.subr.bf16.mxu1 %v2665_v38 }
  0x9f   : > { %752 = vmatpush1.bf16.msra.mxu0 %v2377_v13  ;;  %2063 = vmatmul.mubr.msk.bf16.vlgmr.msra.gmra.mrb[0].mxu1 %vm335_vm0, %v2373_v9 }
  0xa0   : > { %753 = vmatprep.subr.bf16.mxu0 %v2382_v14  ;;  %2148 = vmatprep.mubr.msk.bf16.mxu1 %vm2666_vm1, %v2665_v38 }
  0xa3   : > { %754 = vmatpush1.bf16.msra.mxu0 %v2380_v15 }
  0xa4   : > { %755 = vmatprep.subr.bf16.mxu0 %v2385_v16 }
  0xa7   : > { %756 = vmatpush1.bf16.msra.mxu0 %v2383_v17 }
  0xa8   : > { %2158 = vmatprep.subr.bf16.mxu0 %v2665_v38 }
  0xaa   : > { %2073 = vmatmul.mubr.msk.bf16.vlgmr.msra.gmra.mrb[4].mxu0 %vm335_vm0, %v2386_v18 }
  0xab   : > { %2162 = vmatprep.mubr.msk.bf16.mxu0 %vm2666_vm1, %v2665_v38 }
 0x16d   : > { %v373_v27 = vpop.f32.mrb[0].mxu0 }
 0x16e   : > { %v375_v28 = vpop.f32.mrb[1].mxu0 }
 0x16f   : > { %v377_v29 = vpop.f32.mrb[2].mxu0 }
 0x170   : > { %v382_v30 = vpack.c.bf16 %v377_v29, %v373_v27  ;;  %v379_v31 = vpop.f32.mrb[3].mxu0 }
 0x171   : > { %v383_v32 = vpack.c.bf16 %v379_v31, %v375_v28 }
 0x172   : > { %554 = vrot.lane.b32.xlu1 %v382_v30, %s2662_s23  ;;  %499 = vrot.lane.b32.xlu0 %v382_v30, %s2663_s25  ;;  %v466_v52 = vpop.f32.mrb[0].mxu1 }
 0x173   : > { %v468_v53 = vpop.f32.mrb[1].mxu1 }
 0x174   : > { %v470_v54 = vpop.f32.mrb[2].mxu1 }
 0x175   : > { %v2968_v55 = vpack.c.bf16 %v470_v54, %v466_v52  ;;  %v472_v56 = vpop.f32.mrb[3].mxu1 }
 0x176   : > { %527 = vrot.lane.b32.xlu0 %v382_v30, %s2664_s27  ;;  %603 = vrot.lane.b32.xlu1 %v383_v32, %s2663_s25  ;;  %v2970_v57 = vpack.c.bf16 %v472_v56, %v468_v53 }
 0x177   : > { %497 = vst.msk [vmem:[#allocation3] sm:$0xff] %vm496_vm3, %v2968_v55 }
 0x178   : > { %601 = vst.msk [vmem:[#allocation3 + $0x20] sm:$0xff] %vm496_vm3, %v2970_v57 }
 0x17a   : > { %658 = vrot.lane.b32.xlu1 %v383_v32, %s2662_s23 }
 0x17d   : > { %v783_v33 = vpop.f32.mrb[4].mxu0 }
 0x17e   : > { %v785_v34 = vpop.f32.mrb[5].mxu0  ;;  %v2995_v6 = vld [vmem:[#allocation3] sm:$0xff] }
 0x17f   : > { %v787_v35 = vpop.f32.mrb[6].mxu0 }
 0x180   : > { %v792_v36 = vpack.c.bf16 %v787_v35, %v783_v33  ;;  %v789_v37 = vpop.f32.mrb[7].mxu0 }
 0x181   : > { %v2943_v39 = vpack.c.bf16 %v789_v37, %v785_v34 }
 0x182   : > { %924 = vrot.lane.b32.xlu1 %v792_v36, %s2663_s25 }
 0x186   : > { %1431 = vrot.lane.b32.xlu1 %v2943_v39, %s2663_s25 }
 0x194   : > { %477 = vxpose.xlu0.c.b16.start.end [1/1] (short) (narrow) %v382_v30, 32 }
 0x1a1   : > { %631 = vrot.lane.b32.xlu0 %v383_v32, %s2664_s27 }
 0x1bf   : > { %581 = vxpose.xlu0.c.b16.start.end [1/1] (short) (narrow) %v383_v32, 32 }
 0x1cc   : > { %1051 = vrot.lane.b32.xlu0 %v792_v36, %s2664_s27 }
 0x1d0   : > { %1178 = vrot.lane.b32.xlu0 %v792_v36, %s2662_s23 }
 0x1d4   : > { %1558 = vrot.lane.b32.xlu0 %v2943_v39, %s2664_s27 }
 0x1e4   : > { %v500_v40 = vpop.permute.xlu0 %499  ;;  %v555_v42 = vpop.permute.xlu1 %554 }
 0x1e5   : > { %502 = vxpose.xlu1.c.b16.start.end [1/1] (short) (narrow) %v500_v40, 32 }
 0x1e8   : > { %v528_v41 = vpop.permute.xlu0 %527  ;;  %v604_v43 = vpop.permute.xlu1 %603 }
 0x1ea   : > { %530 = vxpose.xlu1.c.b16.start.end [1/1] (short) (narrow) %v528_v41, 32 }
 0x1ec   : > { %v659_v49 = vpop.permute.xlu1 %658 }
 0x1ef   : > { %557 = vxpose.xlu1.c.b16.start.end [1/1] (short) (narrow) %v555_v42, 32 }
 0x1f4   : > { %606 = vxpose.xlu1.c.b16.start.end [1/1] (short) (narrow) %v604_v43, 32  ;;  %v925_v58 = vpop.permute.xlu1 %924 }
 0x1f8   : > { %v2980_v59 = vpop.permute.xlu1 %1431 }
 0x1fa   : > { %v485_v44 = vpop.trf.xlu0 }
 0x1fb   : > { %494 = vst.msk [vmem:[#allocation2] sm:$0xff] %vm493_vm2, %v485_v44 }
 0x1fc   : > { %1685 = vrot.lane.b32.xlu1 %v2943_v39, %s2662_s23 }
 0x1fe   : > { %v486_v45 = vpop.trf.xlu0 }
 0x1ff   : > { %495 = vst.msk [vmem:[#allocation2 + $0x8] sm:$0xff] %vm493_vm2, %v486_v45 }
 0x202   : > { %v794_v46 = vld [vmem:[#allocation2] sm:$0xff] }
 0x203   : > { %2145 = vmatpush3.bf16.msra.mxu1 %v794_v46 }
 0x204   : > { %2146 = vmatprep.subr.bf16.mxu1 %v2665_v38 }
 0x206   : > { %v795_v47 = vld [vmem:[#allocation2 + $0x8] sm:$0xff] }
 0x207   : > { %2147 = vmatpush3.bf16.msra.mxu1 %v795_v47 }
 0x208   : > { %2152 = vmatprep.subr.bf16.mxu1 %v2665_v38 }
 0x20a   : > { %2149 = vmatmul.mubr.msk.bf16.vlgmr.msra.gmra.mrb[4].mxu1 %vm496_vm3, %v792_v36 }
 0x20b   : > { %2154 = vmatprep.mubr.msk.bf16.mxu1 %vm2666_vm1, %v2665_v38  ;;  %2153 = vmatpush3.bf16.msra.mxu1 %v2995_v6 }
 0x20c   : > { %2166 = vmatprep.subr.bf16.mxu1 %v2665_v38 }
 0x213   : > { %v632_v48 = vpop.permute.xlu0 %631 }
 0x214   : > { %634 = vxpose.xlu0.c.b16.start.end [1/1] (short) (narrow) %v632_v48, 32 }
 0x21f   : > { %661 = vxpose.xlu1.c.b16.start.end [1/1] (short) (narrow) %v659_v49, 32 }
 0x221   : > { %549 = vrot.lane.b32.xlu0 %v2968_v55, %s2664_s27 }
 0x225   : > { %v589_v50 = vpop.trf.xlu0 }
 0x226   : > { %598 = vst.msk [vmem:[#allocation2 + $0x40] sm:$0xff] %vm493_vm2, %v589_v50 }
 0x227   : > { %522 = vrot.lane.b32.xlu1 %v2968_v55, %s2663_s25 }
 0x229   : > { %v590_v51 = vpop.trf.xlu0 }
 0x22a   : > { %599 = vst.msk [vmem:[#allocation2 + $0x48] sm:$0xff] %vm493_vm2, %v590_v51 }
 0x22d   : > { %v1303_v13 = vld [vmem:[#allocation2 + $0x40] sm:$0xff] }
 0x231   : > { %v1304_v14 = vld [vmem:[#allocation2 + $0x48] sm:$0xff] }
 0x23e   : > { %v1052_v7 = vpop.permute.xlu0 %1051 }
 0x242   : > { %v1179_v12 = vpop.permute.xlu0 %1178 }
 0x246   : > { %v1559_v17 = vpop.permute.xlu0 %1558 }
 0x24b   : > { %v510_v60 = vpop.trf.xlu1 }
 0x24c   : > { %519 = vst.msk [vmem:[#allocation2 + $0x10] sm:$0xff] %vm493_vm2, %v510_v60 }
 0x24f   : > { %v511_v61 = vpop.trf.xlu1 }
 0x250   : > { %520 = vst.msk [vmem:[#allocation2 + $0x18] sm:$0xff] %vm493_vm2, %v511_v61 }
 0x253   : > { %v538_v62 = vpop.trf.xlu1  ;;  %v921_v63 = vld [vmem:[#allocation2 + $0x10] sm:$0xff] }
 0x254   : > { %547 = vst.msk [vmem:[#allocation2 + $0x20] sm:$0xff] %vm493_vm2, %v538_v62  ;;  %2159 = vmatpush3.bf16.msra.mxu0 %v921_v63 }
 0x255   : > { %2160 = vmatprep.subr.bf16.mxu0 %v2665_v38 }
 0x257   : > { %v539_v0 = vpop.trf.xlu1  ;;  %v922_v1 = vld [vmem:[#allocation2 + $0x18] sm:$0xff] }
 0x258   : > { %548 = vst.msk [vmem:[#allocation2 + $0x28] sm:$0xff] %vm493_vm2, %v539_v0  ;;  %2161 = vmatpush3.bf16.msra.mxu0 %v922_v1 }
 0x259   : > { %2172 = vmatprep.subr.bf16.mxu0 %v2665_v38 }
 0x25b   : > { %2163 = vmatmul.mubr.msk.bf16.vlgmr.msra.gmra.mrb[8].mxu0 %vm496_vm3, %v925_v58  ;;  %v565_v2 = vpop.trf.xlu1  ;;  %v1049_v3 = vld [vmem:[#allocation2 + $0x20] sm:$0xff] }
 0x25c   : > { %574 = vst.msk [vmem:[#allocation2 + $0x30] sm:$0xff] %vm493_vm2, %v565_v2  ;;  %2173 = vmatpush3.bf16.msra.mxu0 %v1049_v3  ;;  %2176 = vmatprep.mubr.msk.bf16.mxu0 %vm2666_vm1, %v2665_v38 }
 0x25d   : > { %2174 = vmatprep.subr.bf16.mxu0 %v2665_v38 }
 0x25f   : > { %v566_v4 = vpop.trf.xlu1  ;;  %v1050_v5 = vld [vmem:[#allocation2 + $0x28] sm:$0xff] }
 0x260   : > { %575 = vst.msk [vmem:[#allocation2 + $0x38] sm:$0xff] %vm493_vm2, %v566_v4  ;;  %2175 = vmatpush3.bf16.msra.mxu0 %v1050_v5 }
 0x261   : > { %2186 = vmatprep.subr.bf16.mxu0 %v2665_v38 }
 0x263   : > { %2177 = vmatmul.mubr.msk.bf16.vlgmr.msra.gmra.mrb[12].mxu0 %vm496_vm3, %v1052_v7  ;;  %v1176_v8 = vld [vmem:[#allocation2 + $0x30] sm:$0xff]  ;;  %v614_v9 = vpop.trf.xlu1 }
 0x264   : > { %2187 = vmatpush3.bf16.msra.mxu0 %v1176_v8  ;;  %623 = vst.msk [vmem:[#allocation2 + $0x50] sm:$0xff] %vm493_vm2, %v614_v9  ;;  %2190 = vmatprep.mubr.msk.bf16.mxu0 %vm2666_vm1, %v2665_v38 }
 0x265   : > { %2188 = vmatprep.subr.bf16.mxu0 %v2665_v38 }
 0x267   : > { %v1177_v10 = vld [vmem:[#allocation2 + $0x38] sm:$0xff]  ;;  %v615_v11 = vpop.trf.xlu1 }
 0x268   : > { %2189 = vmatpush3.bf16.msra.mxu0 %v1177_v10  ;;  %624 = vst.msk [vmem:[#allocation2 + $0x58] sm:$0xff] %vm493_vm2, %v615_v11 }
 0x269   : > { %2200 = vmatprep.subr.bf16.mxu0 %v2665_v38 }
 0x26b   : > { %2191 = vmatmul.mubr.msk.bf16.vlgmr.msra.gmra.mrb[16].mxu0 %vm496_vm3, %v1179_v12  ;;  %v1428_v15 = vld [vmem:[#allocation2 + $0x50] sm:$0xff] }
 0x26c   : > { %2201 = vmatpush3.bf16.msra.mxu0 %v1303_v13  ;;  %2204 = vmatprep.mubr.msk.bf16.mxu0 %vm2666_vm1, %v2665_v38 }
 0x26d   : > { %2202 = vmatprep.subr.bf16.mxu0 %v2665_v38 }
 0x26e   : > { %v1686_v20 = vpop.permute.xlu1 %1685 }
 0x26f   : > { %v1429_v16 = vld [vmem:[#allocation2 + $0x58] sm:$0xff] }
 0x270   : > { %2203 = vmatpush3.bf16.msra.mxu0 %v1304_v14 }
 0x271   : > { %2214 = vmatprep.subr.bf16.mxu0 %v2665_v38 }
 0x273   : > { %2205 = vmatmul.mubr.msk.bf16.vlgmr.msra.gmra.mrb[20].mxu0 %vm496_vm3, %v2943_v39 }
 0x274   : > { %2215 = vmatpush3.bf16.msra.mxu0 %v1428_v15  ;;  %2218 = vmatprep.mubr.msk.bf16.mxu0 %vm2666_vm1, %v2665_v38 }
 0x275   : > { %2216 = vmatprep.subr.bf16.mxu0 %v2665_v38 }
 0x278   : > { %2217 = vmatpush3.bf16.msra.mxu0 %v1429_v16 }
 0x279   : > { %2228 = vmatprep.subr.bf16.mxu0 %v2665_v38 }
 0x27a   : > { %v642_v18 = vpop.trf.xlu0 }
 0x27b   : > { %651 = vst.msk [vmem:[#allocation2 + $0x60] sm:$0xff] %vm493_vm2, %v642_v18  ;;  %2219 = vmatmul.mubr.msk.bf16.vlgmr.msra.gmra.mrb[24].mxu0 %vm496_vm3, %v2980_v59 }
 0x27c   : > { %2232 = vmatprep.mubr.msk.bf16.mxu0 %vm2666_vm1, %v2665_v38 }
 0x27e   : > { %v643_v19 = vpop.trf.xlu0 }
 0x27f   : > { %652 = vst.msk [vmem:[#allocation2 + $0x68] sm:$0xff] %vm493_vm2, %v643_v19 }
 0x282   : > { %v1556_v21 = vld [vmem:[#allocation2 + $0x60] sm:$0xff] }
 0x283   : > { %2229 = vmatpush3.bf16.msra.mxu0 %v1556_v21 }
 0x284   : > { %2230 = vmatprep.subr.bf16.mxu0 %v2665_v38 }
 0x285   : > { %v669_v22 = vpop.trf.xlu1 }
 0x286   : > { %678 = vst.msk [vmem:[#allocation2 + $0x70] sm:$0xff] %vm493_vm2, %v669_v22  ;;  %v1557_v23 = vld [vmem:[#allocation2 + $0x68] sm:$0xff] }
 0x287   : > { %2231 = vmatpush3.bf16.msra.mxu0 %v1557_v23 }
 0x288   : > { %2242 = vmatprep.subr.bf16.mxu0 %v2665_v38 }
 0x289   : > { %v670_v24 = vpop.trf.xlu1 }
 0x28a   : > { %679 = vst.msk [vmem:[#allocation2 + $0x78] sm:$0xff] %vm493_vm2, %v670_v24  ;;  %2233 = vmatmul.mubr.msk.bf16.vlgmr.msra.gmra.mrb[28].mxu0 %vm496_vm3, %v1559_v17 }
 0x28b   : > { %2246 = vmatprep.mubr.msk.bf16.mxu0 %vm2666_vm1, %v2665_v38 }
 0x28d   : > { %v1683_v25 = vld [vmem:[#allocation2 + $0x70] sm:$0xff] }
 0x28e   : > { %2243 = vmatpush3.bf16.msra.mxu0 %v1683_v25 }
 0x28f   : > { %2244 = vmatprep.subr.bf16.mxu0 %v2665_v38 }
 0x291   : > { %v1684_v26 = vld [vmem:[#allocation2 + $0x78] sm:$0xff] }
 0x292   : > { %2245 = vmatpush3.bf16.msra.mxu0 %v1684_v26 }
 0x293   : > { %v550_v33 = vpop.permute.xlu0 %549 }
 0x294   : > { %553 = vst.msk [vmem:[#allocation3 + $0x10] sm:$0xff] %vm496_vm3, %v550_v33 }
 0x295   : > { %2247 = vmatmul.mubr.msk.bf16.vlgmr.msra.gmra.mrb[32].mxu0 %vm496_vm3, %v1686_v20 }
 0x299   : > { %v523_v34 = vpop.permute.xlu1 %522 }
 0x29a   : > { %526 = vst.msk [vmem:[#allocation3 + $0x8] sm:$0xff] %vm496_vm3, %v523_v34 }
 0x2a1   : > { %v3100_v21 = vld [vmem:[#allocation3 + $0x8] sm:$0xff] }
 0x2dd   : > { %v3032_v27 = vpop.f32.mrb[4].mxu1 }
 0x2de   : > { %v2150_v28 = vpop.f32.mrb[5].mxu1  ;;  %v842_v29 = vsel %vm493_vm2, %v3032_v27, -inf }
 0x2df   : > { %v3036_v30 = vpop.f32.mrb[6].mxu1  ;;  %843 = vmax.xlane.f32.xlu0 %v842_v29 }
 0x2e0   : > { %v2151_v31 = vpop.f32.mrb[7].mxu1  ;;  %v845_v32 = vsel %vm493_vm2, %v3036_v30, -inf }
 0x2e1   : > { %846 = vmax.xlane.f32.xlu1 %v845_v32 }
 0x32e   : > { %v3042_v35 = vpop.f32.mrb[8].mxu0 }
 0x32f   : > { %v2164_v36 = vpop.f32.mrb[9].mxu0  ;;  %v970_v37 = vsel %vm493_vm2, %v3042_v35, -inf }
 0x330   : > { %971 = vmax.xlane.f32.xlu0 %v970_v37  ;;  %v3046_v39 = vpop.f32.mrb[10].mxu0 }
 0x331   : > { %v2165_v40 = vpop.f32.mrb[11].mxu0  ;;  %v973_v41 = vsel %vm493_vm2, %v3046_v39, -inf }
 0x334   : > { %974 = vmax.xlane.f32.xlu0 %v973_v41 }
 0x336   : > { %v3050_v42 = vpop.f32.mrb[12].mxu0 }
 0x337   : > { %v2178_v43 = vpop.f32.mrb[13].mxu0  ;;  %v1097_v44 = vsel %vm493_vm2, %v3050_v42, -inf }
 0x338   : > { %1098 = vmax.xlane.f32.xlu0 %v1097_v44  ;;  %v3054_v45 = vpop.f32.mrb[14].mxu0  ;;  %v3125_v44 = vld [vmem:[#allocation3 + $0x10] sm:$0xff] }
 0x339   : > { %v2179_v46 = vpop.f32.mrb[15].mxu0  ;;  %v1100_v47 = vsel %vm493_vm2, %v3054_v45, -inf }
 0x33c   : > { %1101 = vmax.xlane.f32.xlu0 %v1100_v47 }
 0x33e   : > { %v3058_v48 = vpop.f32.mrb[16].mxu0 }
 0x33f   : > { %v2192_v49 = vpop.f32.mrb[17].mxu0  ;;  %v1224_v50 = vsel %vm493_vm2, %v3058_v48, -inf }
 0x340   : > { %1225 = vmax.xlane.f32.xlu1 %v1224_v50  ;;  %v3062_v51 = vpop.f32.mrb[18].mxu0 }
 0x341   : > { %v2193_v52 = vpop.f32.mrb[19].mxu0  ;;  %v1227_v53 = vsel %vm493_vm2, %v3062_v51, -inf }
 0x342   : > { %1228 = vmax.xlane.f32.xlu0 %v1227_v53 }
 0x346   : > { %v3066_v54 = vpop.f32.mrb[20].mxu0 }
 0x347   : > { %v2206_v56 = vpop.f32.mrb[21].mxu0  ;;  %v1349_v58 = vsel %vm493_vm2, %v3066_v54, -inf }
 0x348   : > { %1350 = vmax.xlane.f32.xlu0 %v1349_v58  ;;  %v3070_v59 = vpop.f32.mrb[22].mxu0 }
 0x349   : > { %v2207_v60 = vpop.f32.mrb[23].mxu0  ;;  %v1352_v61 = vsel %vm493_vm2, %v3070_v59, -inf }
 0x34c   : > { %1353 = vmax.xlane.f32.xlu0 %v1352_v61 }
 0x34e   : > { %v3074_v62 = vpop.f32.mrb[24].mxu0 }
 0x34f   : > { %v2220_v63 = vpop.f32.mrb[25].mxu0  ;;  %v1477_v0 = vsel %vm493_vm2, %v3074_v62, -inf }
 0x350   : > { %1478 = vmax.xlane.f32.xlu1 %v1477_v0  ;;  %v3078_v1 = vpop.f32.mrb[26].mxu0 }
 0x351   : > { %v2221_v2 = vpop.f32.mrb[27].mxu0  ;;  %v1480_v3 = vsel %vm493_vm2, %v3078_v1, -inf }
 0x352   : > { %1481 = vmax.xlane.f32.xlu0 %v1480_v3 }
 0x35d   : > { %v3082_v4 = vpop.f32.mrb[28].mxu0 }
 0x35e   : > { %v2234_v5 = vpop.f32.mrb[29].mxu0  ;;  %v1604_v7 = vsel %vm493_vm2, %v3082_v4, -inf }
 0x35f   : > { %1605 = vmax.xlane.f32.xlu0 %v1604_v7  ;;  %v3086_v8 = vpop.f32.mrb[30].mxu0 }
 0x360   : > { %v2235_v9 = vpop.f32.mrb[31].mxu0  ;;  %v1607_v10 = vsel %vm493_vm2, %v3086_v8, -inf }
 0x361   : > { %576 = vrot.lane.b32.xlu1 %v2968_v55, %s2662_s23 }
 0x363   : > { %1608 = vmax.xlane.f32.xlu0 %v1607_v10 }
 0x368   : > { %v3092_v11 = vpop.f32.mrb[32].mxu0 }
 0x369   : > { %v2248_v12 = vpop.f32.mrb[33].mxu0  ;;  %v1731_v13 = vsel %vm493_vm2, %v3092_v11, -inf }
 0x36a   : > { %1732 = vmax.xlane.f32.xlu0 %v1731_v13  ;;  %v3096_v14 = vpop.f32.mrb[34].mxu0 }
 0x36b   : > { %v2249_v15 = vpop.f32.mrb[35].mxu0  ;;  %v1734_v23 = vsel %vm493_vm2, %v3096_v14, -inf }
 0x36c   : > { %v844_v16 = vpop.xlane.xlu0 %843 }
 0x36d   : > { %v848_v18 = vsub.f32 %v3032_v27, %v844_v16  ;;  %v3150_v16 = vld [vmem:[#allocation3 + $0x20] sm:$0xff] }
 0x36e   : > { %v847_v17 = vpop.xlane.xlu1 %846 }
 0x36f   : > { %v849_v55 = vsub.f32 %v3036_v30, %v847_v17 }
 0x371   : > { %v850_v19 = vpack.c.bf16 %v849_v55, %v848_v18 }
 0x373   : > { %v852_v20 = vmul.bf16 1069105081, %v850_v19 }
 0x375   : > { %2399 = vpow.bf16 %v852_v20 }
 0x380   : > { %v3102_v22 = vpop.eup %2399  ;;  %626 = vrot.lane.b32.xlu0 %v2970_v57, %s2663_s25 }
 0x381   : > { %2155 = vmatmul.mubr.msk.bf16.vlgmr.msra.gmra.mrb[8].mxu1 %vm493_vm2, %v3102_v22 }
 0x382   : > { %2167 = vmatpush3.bf16.msra.mxu1 %v3100_v21  ;;  %2168 = vmatprep.mubr.msk.bf16.mxu1 %vm2666_vm1, %v2665_v38 }
 0x383   : > { %2180 = vmatprep.subr.bf16.mxu1 %v2665_v38 }
 0x384   : > { %653 = vrot.lane.b32.xlu0 %v2970_v57, %s2664_s27 }
 0x385   : > { %1735 = vmax.xlane.f32.xlu1 %v1734_v23 }
 0x388   : > { %680 = vrot.lane.b32.xlu0 %v2970_v57, %s2662_s23 }
 0x3bd   : > { %v972_v24 = vpop.xlane.xlu0 %971 }
 0x3be   : > { %v976_v26 = vsub.f32 %v3042_v35, %v972_v24 }
 0x3c1   : > { %v975_v25 = vpop.xlane.xlu0 %974 }
 0x3c2   : > { %v977_v27 = vsub.f32 %v3046_v39, %v975_v25 }
 0x3c4   : > { %v978_v28 = vpack.c.bf16 %v977_v27, %v976_v26 }
 0x3c5   : > { %v1099_v29 = vpop.xlane.xlu0 %1098 }
 0x3c6   : > { %v980_v30 = vmul.bf16 1069105081, %v978_v28  ;;  %v1103_v32 = vsub.f32 %v3050_v42, %v1099_v29 }
 0x3c8   : > { %2401 = vpow.bf16 %v980_v30 }
 0x3c9   : > { %v1102_v31 = vpop.xlane.xlu0 %1101 }
 0x3ca   : > { %v1104_v33 = vsub.f32 %v3054_v45, %v1102_v31 }
 0x3cc   : > { %v1105_v34 = vpack.c.bf16 %v1104_v33, %v1103_v32 }
 0x3cd   : > { %v1226_v36 = vpop.xlane.xlu1 %1225 }
 0x3ce   : > { %v1107_v37 = vmul.bf16 1069105081, %v1105_v34  ;;  %v1230_v57 = vsub.f32 %v3058_v48, %v1226_v36 }
 0x3cf   : > { %v1229_v40 = vpop.xlane.xlu0 %1228 }
 0x3d0   : > { %2403 = vpow.bf16 %v1107_v37  ;;  %v1231_v35 = vsub.f32 %v3062_v51, %v1229_v40 }
 0x3d2   : > { %v1232_v41 = vpack.c.bf16 %v1231_v35, %v1230_v57 }
 0x3d3   : > { %v2402_v39 = vpop.eup %2401 }
 0x3d4   : > { %v1234_v43 = vmul.bf16 1069105081, %v1232_v41  ;;  %2169 = vmatmul.mubr.msk.bf16.vlgmr.msra.gmra.mrb[12].mxu1 %vm493_vm2, %v2402_v39  ;;  %v982_v46 = vunpack.c.l.bf16 %v2402_v39  ;;  %v983_v42 = vunpack.c.h.bf16 %v2402_v39 }
 0x3d5   : > { %2181 = vmatpush3.bf16.msra.mxu1 %v3125_v44  ;;  %v1351_v45 = vpop.xlane.xlu0 %1350  ;;  %2182 = vmatprep.mubr.msk.bf16.mxu1 %vm2666_vm1, %v2665_v38 }
 0x3d6   : > { %2405 = vpow.bf16 %v1234_v43  ;;  %v984_v47 = vsel %vm493_vm2, %v982_v46, 0.0  ;;  %v987_v48 = vsel %vm493_vm2, %v983_v42, 0.0  ;;  %2194 = vmatprep.subr.bf16.mxu1 %v2665_v38  ;;  %v1355_v50 = vsub.f32 %v3066_v54, %v1351_v45 }
 0x3d7   : > { %985 = vadd.xlane.f32.xlu0 %v984_v47  ;;  %988 = vadd.xlane.f32.xlu1 %v987_v48 }
 0x3d9   : > { %v1354_v49 = vpop.xlane.xlu0 %1353 }
 0x3da   : > { %v1356_v51 = vsub.f32 %v3070_v59, %v1354_v49 }
 0x3db   : > { %v2404_v52 = vpop.eup %2403 }
 0x3dc   : > { %v1357_v53 = vpack.c.bf16 %v1356_v51, %v1355_v50  ;;  %2183 = vmatmul.mubr.msk.bf16.vlgmr.msra.gmra.mrb[16].mxu1 %vm493_vm2, %v2404_v52  ;;  %v1109_v56 = vunpack.c.l.bf16 %v2404_v52  ;;  %v1110_v61 = vunpack.c.h.bf16 %v2404_v52  ;;  %v855_v50 = vunpack.c.h.bf16 %v3102_v22 }
 0x3dd   : > { %v1479_v58 = vpop.xlane.xlu1 %1478  ;;  %2196 = vmatprep.mubr.msk.bf16.mxu1 %vm2666_vm1, %v2665_v38 }
 0x3de   : > { %v1111_v60 = vsel %vm493_vm2, %v1109_v56, 0.0  ;;  %v1483_v0 = vsub.f32 %v3074_v62, %v1479_v58  ;;  %v1114_v5 = vsel %vm493_vm2, %v1110_v61, 0.0  ;;  %v1359_v13 = vmul.bf16 1069105081, %v1357_v53 }
 0x3df   : > { %v1482_v63 = vpop.xlane.xlu0 %1481  ;;  %1112 = vadd.xlane.f32.xlu1 %v1111_v60 }
 0x3e0   : > { %v1484_v54 = vsub.f32 %v3078_v1, %v1482_v63 }
 0x3e1   : > { %v2406_v2 = vpop.eup %2405  ;;  %v577_v59 = vpop.permute.xlu1 %576 }
 0x3e2   : > { %v1485_v3 = vpack.c.bf16 %v1484_v54, %v1483_v0  ;;  %580 = vst.msk [vmem:[#allocation3 + $0x18] sm:$0xff] %vm496_vm3, %v577_v59  ;;  %v1237_v7 = vunpack.c.h.bf16 %v2406_v2  ;;  %v1236_v9 = vunpack.c.l.bf16 %v2406_v2 }
 0x3e3   : > { %1115 = vadd.xlane.f32.xlu1 %v1114_v5  ;;  %v1042_v5 = vunpack.c.l.bf16 %v3100_v21 }
 0x3e4   : > { %v1487_v10 = vmul.bf16 1069105081, %v1485_v3  ;;  %v1241_v12 = vsel %vm493_vm2, %v1237_v7, 0.0  ;;  %v1238_v62 = vsel %vm493_vm2, %v1236_v9, 0.0 }
 0x3e5   : > { %1242 = vadd.xlane.f32.xlu0 %v1241_v12 }
 0x3e6   : > { %2407 = vpow.bf16 %v1487_v10 }
 0x3e7   : > { %1239 = vadd.xlane.f32.xlu1 %v1238_v62  ;;  %2409 = vpow.bf16 %v1359_v13  ;;  %v1043_v62 = vunpack.c.h.bf16 %v3100_v21  ;;  %v1170_v21 = vunpack.c.h.bf16 %v3125_v44 }
 0x3e9   : > { %v3145_v1 = vld [vmem:[#allocation3 + $0x18] sm:$0xff] }
 0x3ea   : > { %2195 = vmatpush3.bf16.msra.mxu1 %v3145_v1 }
 0x3eb   : > { %2208 = vmatprep.subr.bf16.mxu1 %v2665_v38 }
 0x3ec   : > { %v1606_v15 = vpop.xlane.xlu0 %1605 }
 0x3ed   : > { %2197 = vmatmul.mubr.msk.bf16.vlgmr.msra.gmra.mrb[20].mxu1 %vm493_vm2, %v2406_v2  ;;  %v1610_v55 = vsub.f32 %v3082_v4, %v1606_v15 }
 0x3ee   : > { %2209 = vmatpush3.bf16.msra.mxu1 %v3150_v16  ;;  %2210 = vmatprep.mubr.msk.bf16.mxu1 %vm2666_vm1, %v2665_v38 }
 0x3ef   : > { %2222 = vmatprep.subr.bf16.mxu1 %v2665_v38 }
 0x3f0   : > { %v1609_v17 = vpop.xlane.xlu0 %1608 }
 0x3f1   : > { %v2408_v18 = vpop.eup %2407  ;;  %v1611_v19 = vsub.f32 %v3086_v8, %v1609_v17 }
 0x3f2   : > { %v1489_v20 = vunpack.c.l.bf16 %v2408_v18  ;;  %v2410_v24 = vpop.eup %2409  ;;  %v1490_v26 = vunpack.c.h.bf16 %v2408_v18 }
 0x3f3   : > { %v1612_v23 = vpack.c.bf16 %v1611_v19, %v1610_v55  ;;  %v1362_v51 = vunpack.c.h.bf16 %v2410_v24  ;;  %v1361_v52 = vunpack.c.l.bf16 %v2410_v24 }
 0x3f4   : > { %v1491_v25 = vsel %vm493_vm2, %v1489_v20, 0.0  ;;  %v1494_v29 = vsel %vm493_vm2, %v1490_v26, 0.0  ;;  %v1169_v20 = vunpack.c.l.bf16 %v3125_v44 }
 0x3f5   : > { %v1614_v27 = vmul.bf16 1069105081, %v1612_v23  ;;  %1492 = vadd.xlane.f32.xlu1 %v1491_v25  ;;  %2211 = vmatmul.mubr.msk.bf16.vlgmr.msra.gmra.mrb[24].mxu1 %vm493_vm2, %v2410_v24  ;;  %v1366_v53 = vsel %vm493_vm2, %v1362_v51, 0.0  ;;  %v1363_v56 = vsel %vm493_vm2, %v1361_v52, 0.0 }
 0x3f6   : > { %2224 = vmatprep.mubr.msk.bf16.mxu1 %vm2666_vm1, %v2665_v38 }
 0x3f7   : > { %2411 = vpow.bf16 %v1614_v27  ;;  %v1733_v28 = vpop.xlane.xlu0 %1732 }
 0x3f8   : > { %v1737_v41 = vsub.f32 %v3092_v11, %v1733_v28  ;;  %v859_v11 = vsel %vm493_vm2, %v855_v50, 0.0 }
 0x3f9   : > { %1495 = vadd.xlane.f32.xlu1 %v1494_v29 }
 0x3fb   : > { %v627_v4 = vpop.permute.xlu0 %626 }
 0x3fc   : > { %630 = vst.msk [vmem:[#allocation3 + $0x28] sm:$0xff] %vm496_vm3, %v627_v4 }
 0x3ff   : > { %v654_v8 = vpop.permute.xlu0 %653 }
 0x400   : > { %657 = vst.msk [vmem:[#allocation3 + $0x30] sm:$0xff] %vm496_vm3, %v654_v8 }
 0x402   : > { %v2412_v30 = vpop.eup %2411 }
 0x403   : > { %v681_v31 = vpop.permute.xlu0 %680  ;;  %v3165_v32 = vld [vmem:[#allocation3 + $0x28] sm:$0xff]  ;;  %v1616_v33 = vunpack.c.l.bf16 %v2412_v30  ;;  %v1617_v36 = vunpack.c.h.bf16 %v2412_v30 }
 0x404   : > { %684 = vst.msk [vmem:[#allocation3 + $0x38] sm:$0xff] %vm496_vm3, %v681_v31  ;;  %2223 = vmatpush3.bf16.msra.mxu1 %v3165_v32  ;;  %v1549_v52 = vunpack.c.l.bf16 %v3165_v32 }
 0x405   : > { %v1618_v34 = vsel %vm493_vm2, %v1616_v33, 0.0  ;;  %2236 = vmatprep.subr.bf16.mxu1 %v2665_v38  ;;  %v1621_v40 = vsel %vm493_vm2, %v1617_v36, 0.0 }
 0x406   : > { %1619 = vadd.xlane.f32.xlu1 %v1618_v34  ;;  %v1296_v34 = vunpack.c.l.bf16 %v3145_v1 }
 0x407   : > { %2225 = vmatmul.mubr.msk.bf16.vlgmr.msra.gmra.mrb[28].mxu1 %vm493_vm2, %v2408_v18  ;;  %v3172_v37 = vld [vmem:[#allocation3 + $0x30] sm:$0xff] }
 0x408   : > { %2237 = vmatpush3.bf16.msra.mxu1 %v3172_v37  ;;  %2238 = vmatprep.mubr.msk.bf16.mxu1 %vm2666_vm1, %v2665_v38 }
 0x409   : > { %2250 = vmatprep.subr.bf16.mxu1 %v2665_v38 }
 0x40a   : > { %1622 = vadd.xlane.f32.xlu1 %v1621_v40 }
 0x40b   : > { %v3180_v57 = vld [vmem:[#allocation3 + $0x38] sm:$0xff] }
 0x40f   : > { %2239 = vmatmul.mubr.msk.bf16.vlgmr.msra.gmra.mrb[32].mxu1 %vm493_vm2, %v2412_v30 }
 0x410   : > { %2251 = vmatpush3.bf16.msra.mxu1 %v3180_v57  ;;  %2252 = vmatprep.mubr.msk.bf16.mxu1 %vm2666_vm1, %v2665_v38  ;;  %v854_v38 = vunpack.c.l.bf16 %v3102_v22 }
 0x412   : > { %v1736_v35 = vpop.xlane.xlu1 %1735 }
 0x413   : > { %v1738_v39 = vsub.f32 %v3096_v14, %v1736_v35  ;;  %v856_v14 = vsel %vm493_vm2, %v854_v38, 0.0 }
 0x415   : > { %v1739_v43 = vpack.c.bf16 %v1738_v39, %v1737_v41 }
 0x417   : > { %v1741_v46 = vmul.bf16 1069105081, %v1739_v43  ;;  %v1297_v43 = vunpack.c.h.bf16 %v3145_v1 }
 0x419   : > { %2413 = vpow.bf16 %v1741_v46 }
 0x424   : > { %v2414_v42 = vpop.eup %2413 }
 0x425   : > { %2253 = vmatmul.mubr.msk.bf16.vlgmr.msra.gmra.mrb[36].mxu1 %vm493_vm2, %v2414_v42  ;;  %v1744_v45 = vunpack.c.h.bf16 %v2414_v42  ;;  %v1743_v47 = vunpack.c.l.bf16 %v2414_v42 }
 0x427   : > { %v1748_v48 = vsel %vm493_vm2, %v1744_v45, 0.0  ;;  %v1745_v49 = vsel %vm493_vm2, %v1743_v47, 0.0 }
 0x428   : > { %1749 = vadd.xlane.f32.xlu0 %v1748_v48  ;;  %1746 = vadd.xlane.f32.xlu1 %v1745_v49 }
 0x42c   : > { %860 = vadd.xlane.f32.xlu0 %v859_v11  ;;  %857 = vadd.xlane.f32.xlu1 %v856_v14 }
 0x430   : > { %1367 = vadd.xlane.f32.xlu0 %v1366_v53  ;;  %1364 = vadd.xlane.f32.xlu1 %v1363_v56 }
 0x454   : > { %v3196_v58 = vpop.f32.mrb[8].mxu1 }
 0x455   : > { %v2156_v60 = vpop.f32.mrb[9].mxu1 }
 0x456   : > { %v3198_v22 = vpop.f32.mrb[10].mxu1 }
 0x457   : > { %v2157_v61 = vpop.f32.mrb[11].mxu1 }
 0x464   : > { %v986_v63 = vpop.xlane.xlu0 %985  ;;  %v989_v0 = vpop.xlane.xlu1 %988 }
 0x465   : > { %2415 = vrcp.f32 %v986_v63 }
 0x466   : > { %2417 = vrcp.f32 %v989_v0  ;;  %v1550_v0 = vunpack.c.h.bf16 %v3165_v32 }
 0x46c   : > { %v1113_v54 = vpop.xlane.xlu1 %1112 }
 0x46d   : > { %2419 = vrcp.f32 %v1113_v54 }
 0x46f   : > { %v2416_v59 = vpop.eup %2415 }
 0x470   : > { %v1116_v2 = vpop.xlane.xlu1 %1115  ;;  %v2418_v10 = vpop.eup %2417 }
 0x471   : > { %2421 = vrcp.f32 %v1116_v2 }
 0x472   : > { %v1243_v8 = vpop.xlane.xlu0 %1242 }
 0x474   : > { %v1240_v4 = vpop.xlane.xlu1 %1239 }
 0x475   : > { %2423 = vrcp.f32 %v1240_v4 }
 0x476   : > { %2425 = vrcp.f32 %v1243_v8 }
 0x477   : > { %v2420_v55 = vpop.eup %2419 }
 0x47b   : > { %v2422_v25 = vpop.eup %2421 }
 0x47f   : > { %v2424_v31 = vpop.eup %2423 }
 0x480   : > { %v2426_v35 = vpop.eup %2425 }
 0x482   : > { %v1493_v45 = vpop.xlane.xlu1 %1492 }
 0x483   : > { %2427 = vrcp.f32 %v1493_v45 }
 0x486   : > { %v1496_v38 = vpop.xlane.xlu1 %1495 }
 0x487   : > { %2429 = vrcp.f32 %v1496_v38 }
 0x48d   : > { %v2428_v1 = vpop.eup %2427 }
 0x491   : > { %v2430_v60 = vpop.eup %2429 }
 0x493   : > { %v1620_v11 = vpop.xlane.xlu1 %1619 }
 0x494   : > { %2431 = vrcp.f32 %v1620_v11 }
 0x497   : > { %v1623_v14 = vpop.xlane.xlu1 %1622 }
 0x498   : > { %2433 = vrcp.f32 %v1623_v14 }
 0x4a7   : > { %v1029_v3 = vpop.f32.mrb[12].mxu1 }
 0x4a8   : > { %v1044_v7 = vmul.f32 %v2416_v59, %v1029_v3  ;;  %v2170_v9 = vpop.f32.mrb[13].mxu1  ;;  %v2432_v3 = vpop.eup %2431 }
 0x4a9   : > { %v1032_v12 = vpop.f32.mrb[14].mxu1 }
 0x4aa   : > { %v1046_v13 = vadd.f32 %v1044_v7, %v1042_v5  ;;  %v1045_v15 = vmul.f32 %v2418_v10, %v1032_v12  ;;  %v2171_v17 = vpop.f32.mrb[15].mxu1  ;;  %v1676_v7 = vunpack.c.l.bf16 %v3172_v37  ;;  %v2434_v12 = vpop.eup %2433 }
 0x4ac   : > { %v1047_v18 = vadd.f32 %v1045_v15, %v1043_v62  ;;  %1811 = vrot.lane.b32.xlu1 %v1046_v13, %s2662_s23  ;;  %v1677_v15 = vunpack.c.h.bf16 %v3172_v37 }
 0x4ae   : > { %1813 = vrot.lane.b32.xlu0 %v1047_v18, %s2662_s23 }
 0x4af   : > { %v1156_v19 = vpop.f32.mrb[16].mxu1 }
 0x4b0   : > { %v1171_v23 = vmul.f32 %v2420_v55, %v1156_v19  ;;  %v2184_v24 = vpop.f32.mrb[17].mxu1 }
 0x4b1   : > { %v1159_v26 = vpop.f32.mrb[18].mxu1  ;;  %v1803_v24 = vunpack.c.l.bf16 %v3180_v57 }
 0x4b2   : > { %v1173_v27 = vadd.f32 %v1171_v23, %v1169_v20  ;;  %v1172_v28 = vmul.f32 %v2422_v25, %v1159_v26  ;;  %v2185_v29 = vpop.f32.mrb[19].mxu1 }
 0x4b3   : > { %v1804_v29 = vunpack.c.h.bf16 %v3180_v57 }
 0x4b4   : > { %1819 = vrot.lane.b32.xlu1 %v1173_v27, %s2664_s27  ;;  %v1174_v30 = vadd.f32 %v1172_v28, %v1170_v21 }
 0x4b5   : > { %v1747_v55 = vpop.xlane.xlu1 %1746  ;;  %v1750_v19 = vpop.xlane.xlu0 %1749 }
 0x4b6   : > { %2435 = vrcp.f32 %v1747_v55 }
 0x4b7   : > { %2437 = vrcp.f32 %v1750_v19 }
 0x4b8   : > { %1821 = vrot.lane.b32.xlu1 %v1174_v30, %s2664_s27 }
 0x4b9   : > { %v858_v30 = vpop.xlane.xlu1 %857 }
 0x4ba   : > { %2439 = vrcp.f32 %v858_v30 }
 0x4c0   : > { %v1283_v33 = vpop.f32.mrb[20].mxu1  ;;  %v2436_v20 = vpop.eup %2435 }
 0x4c1   : > { %v1298_v36 = vmul.f32 %v2424_v31, %v1283_v33  ;;  %v2198_v40 = vpop.f32.mrb[21].mxu1  ;;  %v2438_v27 = vpop.eup %2437 }
 0x4c2   : > { %v1286_v41 = vpop.f32.mrb[22].mxu1  ;;  %v861_v31 = vpop.xlane.xlu0 %860 }
 0x4c3   : > { %v1300_v39 = vadd.f32 %v1298_v36, %v1296_v34  ;;  %v1299_v44 = vmul.f32 %v2426_v35, %v1286_v41  ;;  %v2199_v46 = vpop.f32.mrb[23].mxu1  ;;  %2441 = vrcp.f32 %v861_v31  ;;  %v1365_v33 = vpop.xlane.xlu1 %1364 }
 0x4c4   : > { %v2440_v36 = vpop.eup %2439  ;;  %2443 = vrcp.f32 %v1365_v33 }
 0x4c5   : > { %v1301_v42 = vadd.f32 %v1299_v44, %v1297_v43  ;;  %1827 = vrot.lane.b32.xlu0 %v1300_v39, %s2663_s25  ;;  %v916_v57 = vmul.f32 %v2440_v36, %v3196_v58  ;;  %v914_v39 = vunpack.c.l.bf16 %v2995_v6 }
 0x4c6   : > { %v1368_v35 = vpop.xlane.xlu0 %1367 }
 0x4c7   : > { %1829 = vrot.lane.b32.xlu1 %v1301_v42, %s2663_s25  ;;  %v918_v46 = vadd.f32 %v916_v57, %v914_v39  ;;  %v915_v42 = vunpack.c.h.bf16 %v2995_v6  ;;  %2445 = vrcp.f32 %v1368_v35 }
 0x4c8   : > { %v3212_v47 = vpop.f32.mrb[24].mxu1 }
 0x4c9   : > { %v2212_v48 = vpop.f32.mrb[25].mxu1 }
 0x4ca   : > { %v3214_v49 = vpop.f32.mrb[26].mxu1 }
 0x4cb   : > { %v2213_v50 = vpop.f32.mrb[27].mxu1 }
 0x4cd   : > { %v2442_v40 = vpop.eup %2441 }
 0x4ce   : > { %v917_v43 = vmul.f32 %v2442_v40, %v3198_v22 }
 0x4d0   : > { %v919_v50 = vadd.f32 %v917_v43, %v915_v42 }
 0x4da   : > { %v1536_v51 = vpop.f32.mrb[28].mxu1 }
 0x4db   : > { %v1551_v53 = vmul.f32 %v2428_v1, %v1536_v51  ;;  %v2226_v56 = vpop.f32.mrb[29].mxu1  ;;  %v2444_v51 = vpop.eup %2443 }
 0x4dc   : > { %v1539_v61 = vpop.f32.mrb[30].mxu1  ;;  %v2446_v56 = vpop.eup %2445 }
 0x4dd   : > { %v1553_v63 = vadd.f32 %v1551_v53, %v1549_v52  ;;  %v1552_v54 = vmul.f32 %v2430_v60, %v1539_v61  ;;  %v2227_v2 = vpop.f32.mrb[31].mxu1  ;;  %v1423_v53 = vmul.f32 %v2444_v51, %v3212_v47  ;;  %v1421_v61 = vunpack.c.l.bf16 %v3150_v16 }
 0x4de   : > { %v1422_v2 = vunpack.c.h.bf16 %v3150_v16 }
 0x4df   : > { %v1554_v59 = vadd.f32 %v1552_v54, %v1550_v0  ;;  %1835 = vrot.lane.b32.xlu0 %v1553_v63, %s2662_s23  ;;  %v1424_v63 = vmul.f32 %v2446_v56, %v3214_v49  ;;  %v1425_v54 = vadd.f32 %v1423_v53, %v1421_v61 }
 0x4e1   : > { %1837 = vrot.lane.b32.xlu1 %v1554_v59, %s2662_s23 }
 0x4e2   : > { %v1663_v5 = vpop.f32.mrb[32].mxu1 }
 0x4e3   : > { %v1678_v9 = vmul.f32 %v2432_v3, %v1663_v5  ;;  %v2240_v10 = vpop.f32.mrb[33].mxu1  ;;  %v1426_v3 = vadd.f32 %v1424_v63, %v1422_v2 }
 0x4e4   : > { %v1666_v13 = vpop.f32.mrb[34].mxu1 }
 0x4e5   : > { %v1680_v62 = vadd.f32 %v1678_v9, %v1676_v7  ;;  %v1679_v17 = vmul.f32 %v2434_v12, %v1666_v13  ;;  %v2241_v32 = vpop.f32.mrb[35].mxu1 }
 0x4e7   : > { %v1681_v18 = vadd.f32 %v1679_v17, %v1677_v15  ;;  %1843 = vrot.lane.b32.xlu0 %v1680_v62, %s2664_s27 }
 0x4e9   : > { %1845 = vrot.lane.b32.xlu1 %v1681_v18, %s2664_s27 }
 0x4f8   : > { %v1790_v23 = vpop.f32.mrb[36].mxu1 }
 0x4f9   : > { %v1805_v25 = vmul.f32 %v2436_v20, %v1790_v23  ;;  %v2254_v26 = vpop.f32.mrb[37].mxu1 }
 0x4fa   : > { %v1793_v28 = vpop.f32.mrb[38].mxu1 }
 0x4fb   : > { %v1807_v37 = vadd.f32 %v1805_v25, %v1803_v24  ;;  %v1806_v4 = vmul.f32 %v2438_v27, %v1793_v28  ;;  %v2255_v21 = vpop.f32.mrb[39].mxu1 }
 0x4fd   : > { %v1808_v8 = vadd.f32 %v1806_v4, %v1804_v29  ;;  %1851 = vrot.lane.b32.xlu0 %v1807_v37, %s2663_s25 }
 0x4ff   : > { %1853 = vrot.lane.b32.xlu1 %v1808_v8, %s2663_s25 }
 0x51e   : > { %v1812_v34 = vpop.permute.xlu1 %1811 }
 0x51f   : > { %v1857_v48 = vsel %vm496_vm3, %v918_v46, %v1812_v34 }
 0x520   : > { %v1814_v44 = vpop.permute.xlu0 %1813 }
 0x521   : > { %v1858_v14 = vsel %vm496_vm3, %v919_v50, %v1814_v44 }
 0x526   : > { %v1820_v41 = vpop.permute.xlu1 %1819 }
 0x527   : > { %v1859_v38 = vsel %vm335_vm0, %v1857_v48, %v1820_v41 }
 0x52a   : > { %v1822_v45 = vpop.permute.xlu1 %1821 }
 0x52b   : > { %v1860_v1 = vsel %vm335_vm0, %v1858_v14, %v1822_v45 }
 0x537   : > { %v1828_v11 = vpop.permute.xlu0 %1827 }
 0x538   : > { %v1862_v58 = vsel %vm1861_vm4, %v1859_v38, %v1828_v11 }
 0x539   : > { %1870 = vst [vmem:[%s3238_s22] sm:$0xff] %v1862_v58  ;;  %v1830_v6 = vpop.permute.xlu1 %1829 }
 0x53a   : > { %v1863_v22 = vsel %vm1861_vm4, %v1860_v1, %v1830_v6 }
 0x53b   : > { %1872 = vst [vmem:[%s3238_s22 + $0x10] sm:$0xff] %v1863_v22 }
 0x551   : > { %v1836_v52 = vpop.permute.xlu0 %1835 }
 0x552   : > { %v1864_v47 = vsel %vm496_vm3, %v1425_v54, %v1836_v52 }
 0x553   : > { %v1838_v60 = vpop.permute.xlu1 %1837 }
 0x554   : > { %v1865_v7 = vsel %vm496_vm3, %v1426_v3, %v1838_v60 }
 0x559   : > { %v1844_v0 = vpop.permute.xlu0 %1843 }
 0x55a   : > { %v1866_v49 = vsel %vm335_vm0, %v1864_v47, %v1844_v0 }
 0x55b   : > { %v1846_v59 = vpop.permute.xlu1 %1845 }
 0x55c   : > { %v1867_v9 = vsel %vm335_vm0, %v1865_v7, %v1846_v59 }
 0x56f   : > { %v1852_v5 = vpop.permute.xlu0 %1851 }
 0x570   : > { %v1868_v16 = vsel %vm1861_vm4, %v1866_v49, %v1852_v5 }
 0x571   : > { %1871 = vst [vmem:[%s3238_s22 + $0x8] sm:$0xff] %v1868_v16  ;;  %v1854_v10 = vpop.permute.xlu1 %1853 }
 0x572   : > { %v1869_v12 = vsel %vm1861_vm4, %v1867_v9, %v1854_v10 }
 0x573   : > { %1873 = vst [vmem:[%s3238_s22 + $0x18] sm:$0xff] %v1869_v12 }
 0x574   : > { %2574 = shalt.err (!%p2571_p0)
}
 0x575   : > { %s2575_s8 = scalar_lea.hbm %s3258_s18, 512  ;;  %s2579_s25 = scalar_lea.hbm %s3315_s4, 1024 }
 0x576   : > { %p2576_p4 = scmp.ne.s32.totalorder %s3258_s18, %s2575_s8  ;;  %p2580_p12 = scmp.lt.u32.totalorder %s3258_s18, %s3315_s4 }
 0x577   : > { %p2581_p1 = scmp.lt.u32.totalorder %s2579_s25, %s2575_s8  ;;  %p2583_p13 = scmp.lt.u32.totalorder %s2575_s8, %s3258_s18 }
 0x578   : > { %p2577_p2 = pnand %p2576_p4, %p2855_p10 }
 0x579   : > { %p2582_p11 = por %p2581_p1, %p2580_p12 }
 0x57a   : > { %p2578_p8 = pneg %p2577_p2 }
 0x57b   : > { %p2584_p6 = por %p2583_p13, %p2582_p11 }
 0x57d   : > { %p2585_p3 = pnand %p2584_p6, %p2578_p8 }
 0x57f   : > { %2588 = shalt.err (!%p2585_p3)
}
 0x580   : > { %s2668_s22 = smov 256   ;;  %s2669_s29 = smov 16  }
 0x581   : > { %2270 = dma.vmem_to_hbm [thread:$0]  (%p2855_p10), %s3250_s28, 512, %s3258_s18, %s1875_s13, %s2668_s22, %s2668_s22, %s2669_s29  }
 0x582 PF: > { %s3335_s10 = sld [smem:[#allocation17_spill]]  ;;  %s1906_s12 = sand.u32 1, %s2631_s15  }
 0x583   : > { %p3337_p7 = scmp.ge.s32.totalorder %s2651_s20, 2  ;;  %s1907_s21 = scalar_lea.sflag [#allocation6], %s1906_s12 }
 0x588   : > { %p3336_p5 = scmp.ne.s32.totalorder %s3335_s10, 0 }
 0x58a   : > { %p2287_p9 = pnand %p3337_p7, %p3336_p5 }
 0x58c   : > { %2626 = dma.done.wait (!%p2287_p9), %s1907_s21, 512  }
 0x58d   : > { %2628 = vsyncadd (!%p2287_p9), %s1907_s21, 4294966784  ;;  %s22_s20 = sadd.s32 1, %s2651_s20   ;;  %s3338_s15 = smov %s2635_s16 }
 0x58e   : > { %p19_p0 = scmp.ge.s32.totalorder %s22_s20, 4   ;;  %s3339_s16 = smov %s2639_s17 }
 0x58f   : > { %s3340_s17 = smov %s2867_s7  ;;  %s3341_s18 = smov %s2647_s19 }
 0x590   : > { %s3342_s19 = smov %s3344_s30  ;;  %21 = sbr.rel (!%p19_p0) target bundleno = 8 (0x8), region = 134 }
 0x597   :  { %1912 = vsyncpa [#allocation5], 1 }
 0x598   :  { %1914 = vsyncpa [#allocation5 + $0x1], 1 }
 0x599   :  { %1915 = vsyncpa [#allocation8], 1 }
 0x59a   :  { %1916 = vsyncpa [#allocation11], 1 }
 0x59b   :  { %1917 = vsyncpa [#allocation6], 1 }
 0x59c   :  { %1919 = vsyncpa [#allocation6 + $0x1], 1 }

</bundles_post_ra>
